<compile_context>
chip_gen: v6e
topology: v6e:2x2x1
jax: 0.10.0
libtpu: 0.0.40
codegen_flags: <defaults>
</compile_context>

<pallas_src>
import math
import functools

import jax
import jax.numpy as jnp
from jax.experimental import pallas as pl
from jax.experimental.pallas import tpu as pltpu

LN_EPS = 1e-5  # config.layer_norm_epsilon


def _vmem_limit_bytes():
    """Generation-aware scoped-VMEM limit (v7x: 64 MiB physical -> 40 MiB;
    v5e/v6e: 128 MiB physical -> 100 MiB; unknown -> conservative 40 MiB)."""
    phys = 0
    try:
        info = pltpu.get_tpu_info()
        phys = int(getattr(info, "vmem_capacity_bytes", 0) or 0)
    except Exception:
        phys = 0
    if phys >= 96 * 1024 * 1024:
        return 100 * 1024 * 1024
    return 40 * 1024 * 1024


def _layernorm(x, g, b):
    mu = jnp.mean(x, axis=-1, keepdims=True)
    var = jnp.mean((x - mu) ** 2, axis=-1, keepdims=True)
    return (x - mu) * jax.lax.rsqrt(var + LN_EPS) * g + b


def _gelu(x):
    # GPT-2 tanh-approx gelu (matches the reference model.py `gelu`).
    return 0.5 * x * (1.0 + jnp.tanh(math.sqrt(2.0 / math.pi)
                                     * (x + 0.044715 * x * x * x)))


# ---------------------------------------------------------------------------
# 1) TestModel / MultiplyStage pipeline: chain of nn.Linear(1, 1) stages.
#    RPC dispatch / locks are host-side plumbing; the whole chain is one
#    kernel launch that loops over an SMEM table of per-stage (w, b).
# ---------------------------------------------------------------------------
def _affine_chain_kernel(wb_ref, x_ref, o_ref, *, n_stages):
    x = x_ref[...]
    for i in range(n_stages):                 # static unroll over the SMEM table
        x = x * wb_ref[i, 0] + wb_ref[i, 1]   # stage i: nn.Linear(1, 1)
    o_ref[...] = x


def test_model_forward(x, stage_params):
    """TestModel.forward: chain MultiplyStage (Linear(1,1)) over all stages,
    collapsed into a single pallas_call (review: one launch instead of N)."""
    lead = x.shape[:-1]
    rows = lead[0] if len(lead) >= 1 else 1
    x2d = x.reshape(rows, -1)                 # lane-dense 2D slab
    wb = jnp.stack([jnp.stack([jnp.asarray(w, jnp.float32).reshape(()),
                               jnp.asarray(b, jnp.float32).reshape(())])
                    for (w, b) in stage_params])        # (n_stages, 2) f32
    n_stages = len(stage_params)
    y2d = pl.pallas_call(
        functools.partial(_affine_chain_kernel, n_stages=n_stages),
        out_shape=jax.ShapeDtypeStruct(x2d.shape, x2d.dtype),
        in_specs=[pl.BlockSpec(memory_space=pltpu.MemorySpace.SMEM),
                  pl.BlockSpec(memory_space=pltpu.MemorySpace.VMEM)],
        out_specs=pl.BlockSpec(memory_space=pltpu.MemorySpace.VMEM),
    )(wb, x2d)
    return y2d.reshape(*lead, 1)


# ---------------------------------------------------------------------------
# 2) GPT-2 transformer block stage (GPT2AttnStage).
# ---------------------------------------------------------------------------
def qkv_kernel(x_ref, ln1_g, ln1_b, w_attn, b_attn,
               q_ref, kt_ref, kp_ref, v_ref, *, n_head):
    """LN1 + fused QKV projection for one (batch, seq-tile) block.

    Heads are split in-kernel and written directly in the layouts pass 2
    consumes (q/v head-major, K transposed to (nh, hd, T)), so no HBM
    transpose is ever materialized.  All outputs are bf16 (halved traffic)."""
    x = x_ref[0]                                        # (tq, C) f32
    C = x.shape[-1]
    hd = C // n_head
    h = _layernorm(x, ln1_g[0], ln1_b[0])               # f32
    qkv = jnp.dot(h.astype(jnp.bfloat16), w_attn[...],
                  preferred_element_type=jnp.float32) + b_attn[0]   # (tq, 3C)
    for i in range(n_head):                             # static unroll
        lo = i * hd
        q_i = qkv[:, lo:lo + hd]                        # (tq, hd)
        k_i = qkv[:, C + lo:C + lo + hd]
        v_i = qkv[:, 2 * C + lo:2 * C + lo + hd]
        q_ref[0, i] = q_i.astype(jnp.bfloat16)
        kt_ref[0, i] = k_i.T.astype(jnp.bfloat16)       # (hd, tq) -> K^T layout
        kp_ref[0, i] = k_i.astype(jnp.bfloat16)         # key for `present`
        v_ref[0, i] = v_i.astype(jnp.bfloat16)


def attn_mlp_kernel(x_ref, q_ref, kt_ref, v_ref,
                    w_aproj, b_aproj, ln2_g, ln2_b,
                    w_fc, b_fc, w_mproj, b_mproj,
                    out_ref,
                    m_ref, l_ref, acc_ref, ctx_ref,
                    *, scale, n_head):
    """Flash-style causal attention (online softmax over kv tiles, all heads
    batched) + combined-head out-projection + MLP for one (batch, q-tile)."""
    kv = pl.program_id(2)
    n_kv = pl.num_programs(2)
    tq = q_ref.shape[2]
    tkv = kt_ref.shape[3]
    q0 = pl.program_id(1) * tq
    k0 = kv * tkv

    @pl.when(kv == 0)
    def _init():
        m_ref[...] = jnp.full(m_ref.shape, -1e30, jnp.float32)
        l_ref[...] = jnp.zeros(l_ref.shape, jnp.float32)
        acc_ref[...] = jnp.zeros(acc_ref.shape, jnp.float32)

    # Skip kv tiles that are entirely above the causal diagonal.
    @pl.when(k0 <= q0 + tq - 1)
    def _accumulate():
        q = q_ref[0]                                    # (nh, tq, hd)  bf16
        kt = kt_ref[0]                                  # (nh, hd, tkv) bf16
        v = v_ref[0]                                    # (nh, tkv, hd) bf16
        # scores: K already transposed -> MXU-natural, lane-dense contraction
        s = jnp.einsum("hqd,hdk->hqk", q, kt,
                       preferred_element_type=jnp.float32) * scale
        row = q0 + jax.lax.broadcasted_iota(jnp.int32, (tq, tkv), 0)
        col = k0 + jax.lax.broadcasted_iota(jnp.int32, (tq, tkv), 1)
        s = s + jnp.where(col <= row, 0.0, -1e10)[None, :, :]
        # online softmax (f32)
        m_prev = m_ref[...]
        m_new = jnp.maximum(m_prev, jnp.max(s, axis=-1, keepdims=True))
        alpha = jnp.exp(m_prev - m_new)
        p = jnp.exp(s - m_new)
        l_ref[...] = alpha * l_ref[...] + jnp.sum(p, axis=-1, keepdims=True)
        acc_ref[...] = alpha * acc_ref[...] + jnp.einsum(
            "hqk,hkd->hqd", p.astype(jnp.bfloat16), v,
            preferred_element_type=jnp.float32)
        m_ref[...] = m_new

    @pl.when(kv == n_kv - 1)
    def _finalize():
        hd = acc_ref.shape[2]
        # collapse heads back onto the feature/lane axis (exact normalization)
        for i in range(n_head):
            ctx_ref[:, i * hd:(i + 1) * hd] = acc_ref[i] / l_ref[i]
        x = x_ref[0]                                    # (tq, C) f32
        # single C-deep output projection (full MXU contraction, no per-head)
        a = jnp.dot(ctx_ref[...].astype(jnp.bfloat16), w_aproj[...],
                    preferred_element_type=jnp.float32) + b_aproj[0]
        x1 = x + a
        h2 = _layernorm(x1, ln2_g[0], ln2_b[0])
        fc = _gelu(jnp.dot(h2.astype(jnp.bfloat16), w_fc[...],
                           preferred_element_type=jnp.float32) + b_fc[0])
        m_out = jnp.dot(fc.astype(jnp.bfloat16), w_mproj[...],
                        preferred_element_type=jnp.float32) + b_mproj[0]
        out_ref[0] = x1 + m_out


def transformer_block(x, p, n_head, *, vmem_limit, tq_max):
    B, T, C = x.shape
    hd = C // n_head
    tq = min(T, tq_max)
    assert T % tq == 0, "sequence length must be divisible by the q-tile"
    tkv = tq
    n_q, n_kv = T // tq, T // tkv
    bf16 = jnp.bfloat16

    cp2 = pltpu.CompilerParams(
        dimension_semantics=("parallel", "parallel"),
        vmem_limit_bytes=vmem_limit)
    cp3 = pltpu.CompilerParams(
        dimension_semantics=("parallel", "parallel", "arbitrary"),
        vmem_limit_bytes=vmem_limit)

    def const2(shape):
        return pl.BlockSpec(shape, lambda b, t: (0,) * len(shape))

    def const3(shape):
        return pl.BlockSpec(shape, lambda b, t, k: (0,) * len(shape))

    # -- pass 1: LN1 + QKV projection, head-split bf16 outputs ---------------
    q, kt, kp, v = pl.pallas_call(
        functools.partial(qkv_kernel, n_head=n_head),
        out_shape=(
            jax.ShapeDtypeStruct((B, n_head, T, hd), bf16),   # q
            jax.ShapeDtypeStruct((B, n_head, hd, T), bf16),   # K^T (MXU layout)
            jax.ShapeDtypeStruct((B, n_head, T, hd), bf16),   # key for present
            jax.ShapeDtypeStruct((B, n_head, T, hd), bf16),   # value
        ),
        grid_spec=pltpu.PrefetchScalarGridSpec(
            num_scalar_prefetch=0,
            grid=(B, n_q),
            in_specs=[
                pl.BlockSpec((1, tq, C), lambda b, t: (b, t, 0)),   # x
                const2((1, C)), const2((1, C)),                     # ln1 g, b
                const2((C, 3 * C)), const2((1, 3 * C)),             # c_attn
            ],
            out_specs=[
                pl.BlockSpec((1, n_head, tq, hd), lambda b, t: (b, 0, t, 0)),
                pl.BlockSpec((1, n_head, hd, tq), lambda b, t: (b, 0, 0, t)),
                pl.BlockSpec((1, n_head, tq, hd), lambda b, t: (b, 0, t, 0)),
                pl.BlockSpec((1, n_head, tq, hd), lambda b, t: (b, 0, t, 0)),
            ],
        ),
        compiler_params=cp2,
    )(x, p["ln1_g"], p["ln1_b"], p["w_attn"], p["b_attn"])

    # -- pass 2: flash-style causal attention + out-proj + MLP ---------------
    out = pl.pallas_call(
        functools.partial(attn_mlp_kernel,
                          scale=1.0 / math.sqrt(hd), n_head=n_head),
        out_shape=jax.ShapeDtypeStruct((B, T, C), x.dtype),
        grid_spec=pltpu.PrefetchScalarGridSpec(
            num_scalar_prefetch=0,
            grid=(B, n_q, n_kv),
            in_specs=[
                pl.BlockSpec((1, tq, C), lambda b, t, k: (b, t, 0)),              # x
                pl.BlockSpec((1, n_head, tq, hd), lambda b, t, k: (b, 0, t, 0)),  # q
                pl.BlockSpec((1, n_head, hd, tkv), lambda b, t, k: (b, 0, 0, k)), # K^T tile
                pl.BlockSpec((1, n_head, tkv, hd), lambda b, t, k: (b, 0, k, 0)), # V tile
                const3((C, C)), const3((1, C)),            # attn c_proj
                const3((1, C)), const3((1, C)),            # ln2 g, b
                const3((C, 4 * C)), const3((1, 4 * C)),    # mlp c_fc
                const3((4 * C, C)), const3((1, C)),        # mlp c_proj
            ],
            out_specs=pl.BlockSpec((1, tq, C), lambda b, t, k: (b, t, 0)),
            scratch_shapes=[
                pltpu.VMEM((n_head, tq, 1), jnp.float32),    # running max
                pltpu.VMEM((n_head, tq, 1), jnp.float32),    # running denom
                pltpu.VMEM((n_head, tq, hd), jnp.float32),   # running context
                pltpu.VMEM((tq, C), jnp.float32),            # collapsed heads
            ],
        ),
        compiler_params=cp3,
    )(x, q, kt, v,
      p["w_aproj"], p["b_aproj"], p["ln2_g"], p["ln2_b"],
      p["w_fc"], p["b_fc"], p["w_mproj"], p["b_mproj"])

    # present = stack(key.transpose(-2,-1), value): since key was split with
    # k=True in the reference, the stored present key/value are both
    # (B, nh, T, hd) -> exactly kp / v as emitted by pass 1 (no transposes).
    return out, kp, v


def init_block_params(key, C):
    ks = jax.random.split(key, 4)
    return dict(
        ln1_g=jnp.ones((1, C), jnp.float32),
        ln1_b=jnp.zeros((1, C), jnp.float32),
        w_attn=0.02 * jax.random.normal(ks[0], (C, 3 * C), jnp.float32),
        b_attn=jnp.zeros((1, 3 * C), jnp.float32),
        w_aproj=0.02 * jax.random.normal(ks[1], (C, C), jnp.float32),
        b_aproj=jnp.zeros((1, C), jnp.float32),
        ln2_g=jnp.ones((1, C), jnp.float32),
        ln2_b=jnp.zeros((1, C), jnp.float32),
        w_fc=0.02 * jax.random.normal(ks[2], (C, 4 * C), jnp.float32),
        b_fc=jnp.zeros((1, 4 * C), jnp.float32),
        w_mproj=0.02 * jax.random.normal(ks[3], (4 * C, C), jnp.float32),
        b_mproj=jnp.zeros((1, C), jnp.float32),
    )


def prepare_block_params(p):
    """Hoisted (one-time) f32->bf16 weight casts (review item)."""
    q = dict(p)
    for name in ("w_attn", "w_aproj", "w_fc", "w_mproj"):
        q[name] = p[name].astype(jnp.bfloat16)
    return q


def gpt2_attn_stage_forward(hidden_states, layer_params, n_head,
                            presents=None, past=None, len_past=None):
    """Mirrors GPT2AttnStage.forward: run each Block, stack presents."""
    n_layers = len(layer_params)
    if past is None:
        past = [None] * n_layers
    vmem_limit = _vmem_limit_bytes()
    # bigger q-tile when the VMEM budget allows (v5e/v6e); 128 on v7x-class
    tq_max = 256 if vmem_limit > 64 * 1024 * 1024 else 128
    pres_list = [] if presents is None else [presents]
    for p, layer_past in zip(layer_params, past):
        # TODO(synk): layer_past / len_past incremental-decoding KV cache not
        # supported; full causal self-attention only (layer_past must be None).
        hidden_states, kh, vh = transformer_block(
            hidden_states, p, n_head, vmem_limit=vmem_limit, tq_max=tq_max)
        present = jnp.stack([kh, vh]).astype(hidden_states.dtype)  # (2,B,nh,T,hd)
        pres_list.append(present[None])                            # unsqueeze(0)
    presents = jnp.concatenate(pres_list, axis=0)
    return hidden_states, presents, past, len_past


# -- pure-JAX f32 reference for the block (kernel uses bf16 matmul inputs) ---
def _block_ref(x, p, n_head):
    B, T, C = x.shape
    hd = C // n_head
    h = _layernorm(x, p["ln1_g"][0], p["ln1_b"][0])
    qkv = h @ p["w_attn"] + p["b_attn"][0]
    q, k, v = jnp.split(qkv, 3, axis=-1)
    heads = lambda t: t.reshape(B, T, n_head, hd).transpose(0, 2, 1, 3)
    qh, kh, vh = heads(q), heads(k), heads(v)
    w = jnp.einsum("bhqd,bhkd->bhqk", qh, kh) / math.sqrt(hd)
    mask = (jnp.arange(T)[:, None] >= jnp.arange(T)[None, :]).astype(jnp.float32)
    w = w * mask - 1e10 * (1.0 - mask)
    pattn = jax.nn.softmax(w, axis=-1)
    ctx = jnp.einsum("bhqk,bhkd->bhqd", pattn, vh)
    ctx = ctx.transpose(0, 2, 1, 3).reshape(B, T, C)
    x1 = x + ctx @ p["w_aproj"] + p["b_aproj"][0]
    h2 = _layernorm(x1, p["ln2_g"][0], p["ln2_b"][0])
    m = _gelu(h2 @ p["w_fc"] + p["b_fc"][0]) @ p["w_mproj"] + p["b_mproj"][0]
    return x1 + m


if __name__ == "__main__":
    key = jax.random.PRNGKey(0)

    # ---- GPT-2 block stage (subject of the performance review) ------------
    B, T, C, N_HEAD, N_LAYER = 2, 32, 128, 4, 2
    key_x, key_p, *layer_keys = jax.random.split(key, N_LAYER + 2)
    hidden_states = jax.random.normal(key_x, (B, T, C), jnp.float32)
    raw_params = [init_block_params(k, C) for k in layer_keys]
    params = [prepare_block_params(p) for p in raw_params]   # casts hoisted

    out_hidden, presents, past, len_past = gpt2_attn_stage_forward(
        hidden_states, params, N_HEAD, presents=None, past=None, len_past=None)
    jax.block_until_ready(out_hidden)
    jax.block_until_ready(presents)
    assert out_hidden.shape == (B, T, C)
    assert presents.shape == (N_LAYER, 2, B, N_HEAD, T, C // N_HEAD)

    x_ref = hidden_states
    for p in raw_params:
        x_ref = _block_ref(x_ref, p, N_HEAD)
    err = float(jnp.max(jnp.abs(out_hidden - x_ref)))
    assert err < 5e-2, f"GPT-2 block kernel mismatch vs f32 reference: {err}"

    # ---- TestModel / MultiplyStage pipeline chain (literal spec forward) ---
    N_STAGES = 3
    kx, kw = jax.random.split(key_p)
    x_pipe = jax.random.normal(kx, (2, 8, 1), jnp.float32)
    wb = jax.random.uniform(kw, (N_STAGES, 2), jnp.float32, -1.0, 1.0)
    stage_params = [(wb[i, 0], wb[i, 1]) for i in range(N_STAGES)]

    y_pipe = test_model_forward(x_pipe, stage_params)
    jax.block_until_ready(y_pipe)
    assert y_pipe.shape == x_pipe.shape
    y_ref = x_pipe
    for w, b in stage_params:
        y_ref = y_ref * w + b
    assert float(jnp.max(jnp.abs(y_pipe - y_ref))) < 1e-5

    print("KERNEL_OK")
</pallas_src>

<mosaic_0001>
module attributes {stable_mosaic.version = 11 : i64} {
  func.func @qkv_kernel(%arg0: i32, %arg1: i32, %arg2: memref<1x32x128xf32, #tpu.memory_space<vmem>>, %arg3: memref<1x128xf32, #tpu.memory_space<vmem>>, %arg4: memref<1x128xf32, #tpu.memory_space<vmem>>, %arg5: memref<128x384xbf16, #tpu.memory_space<vmem>>, %arg6: memref<1x384xf32, #tpu.memory_space<vmem>>, %arg7: memref<1x4x32x32xbf16, #tpu.memory_space<vmem>>, %arg8: memref<1x4x32x32xbf16, #tpu.memory_space<vmem>>, %arg9: memref<1x4x32x32xbf16, #tpu.memory_space<vmem>>, %arg10: memref<1x4x32x32xbf16, #tpu.memory_space<vmem>>) attributes {dimension_semantics = [#tpu.dimension_semantics<parallel>, #tpu.dimension_semantics<parallel>], iteration_bounds = array<i64: 2, 1>, scalar_prefetch = 0 : i64, scratch_operands = 0 : i64, tpu.core_type = #tpu.core_type<tc>, window_params = [{transform_indices = @transform_0, window_bounds = array<i64: 1, 32, 128>}, {pipeline_mode = #tpu.pipeline_mode<synchronous>, transform_indices = @transform_1, window_bounds = array<i64: 1, 128>}, {pipeline_mode = #tpu.pipeline_mode<synchronous>, transform_indices = @transform_2, window_bounds = array<i64: 1, 128>}, {pipeline_mode = #tpu.pipeline_mode<synchronous>, transform_indices = @transform_3, window_bounds = array<i64: 128, 384>}, {pipeline_mode = #tpu.pipeline_mode<synchronous>, transform_indices = @transform_4, window_bounds = array<i64: 1, 384>}, {transform_indices = @transform_5, window_bounds = array<i64: 1, 4, 32, 32>}, {transform_indices = @transform_6, window_bounds = array<i64: 1, 4, 32, 32>}, {transform_indices = @transform_7, window_bounds = array<i64: 1, 4, 32, 32>}, {transform_indices = @transform_8, window_bounds = array<i64: 1, 4, 32, 32>}]} {
    %c0 = arith.constant 0 : index
    %c0_0 = arith.constant 0 : index
    %c0_1 = arith.constant 0 : index
    %0 = vector.load %arg2[%c0, %c0_0, %c0_1] : memref<1x32x128xf32, #tpu.memory_space<vmem>>, vector<1x32x128xf32>
    %1 = vector.shape_cast %0 : vector<1x32x128xf32> to vector<32x128xf32>
    %c0_2 = arith.constant 0 : index
    %c0_3 = arith.constant 0 : index
    %2 = vector.load %arg3[%c0_2, %c0_3] : memref<1x128xf32, #tpu.memory_space<vmem>>, vector<1x128xf32>
    %3 = vector.shape_cast %2 : vector<1x128xf32> to vector<128xf32>
    %c0_4 = arith.constant 0 : index
    %c0_5 = arith.constant 0 : index
    %4 = vector.load %arg4[%c0_4, %c0_5] : memref<1x128xf32, #tpu.memory_space<vmem>>, vector<1x128xf32>
    %5 = vector.shape_cast %4 : vector<1x128xf32> to vector<128xf32>
    %cst = arith.constant dense<0.000000e+00> : vector<32xf32>
    %6 = vector.multi_reduction <add>, %1, %cst [1] : vector<32x128xf32> to vector<32xf32>
    %7 = vector.shape_cast %6 : vector<32xf32> to vector<32x1xf32>
    %cst_6 = arith.constant 1.280000e+02 : f32
    %8 = vector.broadcast %cst_6 : f32 to vector<32x1xf32>
    %9 = arith.divf %7, %8 : vector<32x1xf32>
    %10 = vector.broadcast %9 : vector<32x1xf32> to vector<32x128xf32>
    %11 = arith.subf %1, %10 : vector<32x128xf32>
    %12 = arith.mulf %11, %11 : vector<32x128xf32>
    %cst_7 = arith.constant dense<0.000000e+00> : vector<32xf32>
    %13 = vector.multi_reduction <add>, %12, %cst_7 [1] : vector<32x128xf32> to vector<32xf32>
    %14 = vector.shape_cast %13 : vector<32xf32> to vector<32x1xf32>
    %cst_8 = arith.constant 1.280000e+02 : f32
    %15 = vector.broadcast %cst_8 : f32 to vector<32x1xf32>
    %16 = arith.divf %14, %15 : vector<32x1xf32>
    %17 = vector.broadcast %9 : vector<32x1xf32> to vector<32x128xf32>
    %18 = arith.subf %1, %17 : vector<32x128xf32>
    %cst_9 = arith.constant 9.99999974E-6 : f32
    %19 = vector.broadcast %cst_9 : f32 to vector<32x1xf32>
    %20 = arith.addf %16, %19 : vector<32x1xf32>
    %21 = math.rsqrt %20 : vector<32x1xf32>
    %22 = vector.broadcast %21 : vector<32x1xf32> to vector<32x128xf32>
    %23 = arith.mulf %18, %22 : vector<32x128xf32>
    %24 = vector.shape_cast %3 : vector<128xf32> to vector<1x128xf32>
    %25 = vector.broadcast %24 : vector<1x128xf32> to vector<32x128xf32>
    %26 = arith.mulf %23, %25 : vector<32x128xf32>
    %27 = vector.shape_cast %5 : vector<128xf32> to vector<1x128xf32>
    %28 = vector.broadcast %27 : vector<1x128xf32> to vector<32x128xf32>
    %29 = arith.addf %26, %28 : vector<32x128xf32>
    %30 = arith.truncf %29 : vector<32x128xf32> to vector<32x128xbf16>
    %c0_10 = arith.constant 0 : index
    %c0_11 = arith.constant 0 : index
    %31 = vector.load %arg5[%c0_10, %c0_11] : memref<128x384xbf16, #tpu.memory_space<vmem>>, vector<128x384xbf16>
    %cst_12 = arith.constant dense<0.000000e+00> : vector<32x384xf32>
    %32 = tpu.matmul %30, %31, %cst_12 {dimension_numbers = #tpu.dot_dimension_numbers<[1], [0], [0], [1], [0, 0, 1, 1], [], []>} : vector<32x128xbf16>, vector<128x384xbf16>, vector<32x384xf32> -> vector<32x384xf32>
    %c0_13 = arith.constant 0 : index
    %c0_14 = arith.constant 0 : index
    %33 = vector.load %arg6[%c0_13, %c0_14] : memref<1x384xf32, #tpu.memory_space<vmem>>, vector<1x384xf32>
    %34 = vector.shape_cast %33 : vector<1x384xf32> to vector<384xf32>
    %35 = vector.shape_cast %34 : vector<384xf32> to vector<1x384xf32>
    %36 = vector.broadcast %35 : vector<1x384xf32> to vector<32x384xf32>
    %37 = arith.addf %32, %36 : vector<32x384xf32>
    %38 = vector.extract_strided_slice %37 {offsets = [0, 0], sizes = [32, 32], strides = [1, 1]} : vector<32x384xf32> to vector<32x32xf32>
    %39 = vector.extract_strided_slice %37 {offsets = [0, 128], sizes = [32, 32], strides = [1, 1]} : vector<32x384xf32> to vector<32x32xf32>
    %40 = vector.extract_strided_slice %37 {offsets = [0, 256], sizes = [32, 32], strides = [1, 1]} : vector<32x384xf32> to vector<32x32xf32>
    %41 = arith.truncf %38 : vector<32x32xf32> to vector<32x32xbf16>
    %c0_15 = arith.constant 0 : index
    %c0_16 = arith.constant 0 : index
    %c0_17 = arith.constant 0 : index
    %c0_18 = arith.constant 0 : index
    %42 = vector.load %arg7[%c0_15, %c0_16, %c0_17, %c0_18] : memref<1x4x32x32xbf16, #tpu.memory_space<vmem>>, vector<1x1x32x32xbf16>
    %43 = vector.shape_cast %42 : vector<1x1x32x32xbf16> to vector<32x32xbf16>
    %44 = vector.shape_cast %41 : vector<32x32xbf16> to vector<1x1x32x32xbf16>
    tpu.vector_store %arg7[%c0_15, %c0_16, %c0_17, %c0_18], %44 {strides = array<i32>} : memref<1x4x32x32xbf16, #tpu.memory_space<vmem>>, vector<1x1x32x32xbf16>,
    %45 = tpu.transpose %39, [1, 0] : vector<32x32xf32> -> vector<32x32xf32>
    %46 = arith.truncf %45 : vector<32x32xf32> to vector<32x32xbf16>
    %c0_19 = arith.constant 0 : index
    %c0_20 = arith.constant 0 : index
    %c0_21 = arith.constant 0 : index
    %c0_22 = arith.constant 0 : index
    %47 = vector.load %arg8[%c0_19, %c0_20, %c0_21, %c0_22] : memref<1x4x32x32xbf16, #tpu.memory_space<vmem>>, vector<1x1x32x32xbf16>
    %48 = vector.shape_cast %47 : vector<1x1x32x32xbf16> to vector<32x32xbf16>
    %49 = vector.shape_cast %46 : vector<32x32xbf16> to vector<1x1x32x32xbf16>
    tpu.vector_store %arg8[%c0_19, %c0_20, %c0_21, %c0_22], %49 {strides = array<i32>} : memref<1x4x32x32xbf16, #tpu.memory_space<vmem>>, vector<1x1x32x32xbf16>,
    %50 = arith.truncf %39 : vector<32x32xf32> to vector<32x32xbf16>
    %c0_23 = arith.constant 0 : index
    %c0_24 = arith.constant 0 : index
    %c0_25 = arith.constant 0 : index
    %c0_26 = arith.constant 0 : index
    %51 = vector.load %arg9[%c0_23, %c0_24, %c0_25, %c0_26] : memref<1x4x32x32xbf16, #tpu.memory_space<vmem>>, vector<1x1x32x32xbf16>
    %52 = vector.shape_cast %51 : vector<1x1x32x32xbf16> to vector<32x32xbf16>
    %53 = vector.shape_cast %50 : vector<32x32xbf16> to vector<1x1x32x32xbf16>
    tpu.vector_store %arg9[%c0_23, %c0_24, %c0_25, %c0_26], %53 {strides = array<i32>} : memref<1x4x32x32xbf16, #tpu.memory_space<vmem>>, vector<1x1x32x32xbf16>,
    %54 = arith.truncf %40 : vector<32x32xf32> to vector<32x32xbf16>
    %c0_27 = arith.constant 0 : index
    %c0_28 = arith.constant 0 : index
    %c0_29 = arith.constant 0 : index
    %c0_30 = arith.constant 0 : index
    %55 = vector.load %arg10[%c0_27, %c0_28, %c0_29, %c0_30] : memref<1x4x32x32xbf16, #tpu.memory_space<vmem>>, vector<1x1x32x32xbf16>
    %56 = vector.shape_cast %55 : vector<1x1x32x32xbf16> to vector<32x32xbf16>
    %57 = vector.shape_cast %54 : vector<32x32xbf16> to vector<1x1x32x32xbf16>
    tpu.vector_store %arg10[%c0_27, %c0_28, %c0_29, %c0_30], %57 {strides = array<i32>} : memref<1x4x32x32xbf16, #tpu.memory_space<vmem>>, vector<1x1x32x32xbf16>,
    %58 = vector.extract_strided_slice %37 {offsets = [0, 32], sizes = [32, 32], strides = [1, 1]} : vector<32x384xf32> to vector<32x32xf32>
    %59 = vector.extract_strided_slice %37 {offsets = [0, 160], sizes = [32, 32], strides = [1, 1]} : vector<32x384xf32> to vector<32x32xf32>
    %60 = vector.extract_strided_slice %37 {offsets = [0, 288], sizes = [32, 32], strides = [1, 1]} : vector<32x384xf32> to vector<32x32xf32>
    %61 = arith.truncf %58 : vector<32x32xf32> to vector<32x32xbf16>
    %c0_31 = arith.constant 0 : index
    %c1 = arith.constant 1 : index
    %c0_32 = arith.constant 0 : index
    %c0_33 = arith.constant 0 : index
    %62 = vector.load %arg7[%c0_31, %c1, %c0_32, %c0_33] : memref<1x4x32x32xbf16, #tpu.memory_space<vmem>>, vector<1x1x32x32xbf16>
    %63 = vector.shape_cast %62 : vector<1x1x32x32xbf16> to vector<32x32xbf16>
    %64 = vector.shape_cast %61 : vector<32x32xbf16> to vector<1x1x32x32xbf16>
    tpu.vector_store %arg7[%c0_31, %c1, %c0_32, %c0_33], %64 {strides = array<i32>} : memref<1x4x32x32xbf16, #tpu.memory_space<vmem>>, vector<1x1x32x32xbf16>,
    %65 = tpu.transpose %59, [1, 0] : vector<32x32xf32> -> vector<32x32xf32>
    %66 = arith.truncf %65 : vector<32x32xf32> to vector<32x32xbf16>
    %c0_34 = arith.constant 0 : index
    %c1_35 = arith.constant 1 : index
    %c0_36 = arith.constant 0 : index
    %c0_37 = arith.constant 0 : index
    %67 = vector.load %arg8[%c0_34, %c1_35, %c0_36, %c0_37] : memref<1x4x32x32xbf16, #tpu.memory_space<vmem>>, vector<1x1x32x32xbf16>
    %68 = vector.shape_cast %67 : vector<1x1x32x32xbf16> to vector<32x32xbf16>
    %69 = vector.shape_cast %66 : vector<32x32xbf16> to vector<1x1x32x32xbf16>
    tpu.vector_store %arg8[%c0_34, %c1_35, %c0_36, %c0_37], %69 {strides = array<i32>} : memref<1x4x32x32xbf16, #tpu.memory_space<vmem>>, vector<1x1x32x32xbf16>,
    %70 = arith.truncf %59 : vector<32x32xf32> to vector<32x32xbf16>
    %c0_38 = arith.constant 0 : index
    %c1_39 = arith.constant 1 : index
    %c0_40 = arith.constant 0 : index
    %c0_41 = arith.constant 0 : index
    %71 = vector.load %arg9[%c0_38, %c1_39, %c0_40, %c0_41] : memref<1x4x32x32xbf16, #tpu.memory_space<vmem>>, vector<1x1x32x32xbf16>
    %72 = vector.shape_cast %71 : vector<1x1x32x32xbf16> to vector<32x32xbf16>
    %73 = vector.shape_cast %70 : vector<32x32xbf16> to vector<1x1x32x32xbf16>
    tpu.vector_store %arg9[%c0_38, %c1_39, %c0_40, %c0_41], %73 {strides = array<i32>} : memref<1x4x32x32xbf16, #tpu.memory_space<vmem>>, vector<1x1x32x32xbf16>,
    %74 = arith.truncf %60 : vector<32x32xf32> to vector<32x32xbf16>
    %c0_42 = arith.constant 0 : index
    %c1_43 = arith.constant 1 : index
    %c0_44 = arith.constant 0 : index
    %c0_45 = arith.constant 0 : index
    %75 = vector.load %arg10[%c0_42, %c1_43, %c0_44, %c0_45] : memref<1x4x32x32xbf16, #tpu.memory_space<vmem>>, vector<1x1x32x32xbf16>
    %76 = vector.shape_cast %75 : vector<1x1x32x32xbf16> to vector<32x32xbf16>
    %77 = vector.shape_cast %74 : vector<32x32xbf16> to vector<1x1x32x32xbf16>
    tpu.vector_store %arg10[%c0_42, %c1_43, %c0_44, %c0_45], %77 {strides = array<i32>} : memref<1x4x32x32xbf16, #tpu.memory_space<vmem>>, vector<1x1x32x32xbf16>,
    %78 = vector.extract_strided_slice %37 {offsets = [0, 64], sizes = [32, 32], strides = [1, 1]} : vector<32x384xf32> to vector<32x32xf32>
    %79 = vector.extract_strided_slice %37 {offsets = [0, 192], sizes = [32, 32], strides = [1, 1]} : vector<32x384xf32> to vector<32x32xf32>
    %80 = vector.extract_strided_slice %37 {offsets = [0, 320], sizes = [32, 32], strides = [1, 1]} : vector<32x384xf32> to vector<32x32xf32>
    %81 = arith.truncf %78 : vector<32x32xf32> to vector<32x32xbf16>
    %c0_46 = arith.constant 0 : index
    %c2 = arith.constant 2 : index
    %c0_47 = arith.constant 0 : index
    %c0_48 = arith.constant 0 : index
    %82 = vector.load %arg7[%c0_46, %c2, %c0_47, %c0_48] : memref<1x4x32x32xbf16, #tpu.memory_space<vmem>>, vector<1x1x32x32xbf16>
    %83 = vector.shape_cast %82 : vector<1x1x32x32xbf16> to vector<32x32xbf16>
    %84 = vector.shape_cast %81 : vector<32x32xbf16> to vector<1x1x32x32xbf16>
    tpu.vector_store %arg7[%c0_46, %c2, %c0_47, %c0_48], %84 {strides = array<i32>} : memref<1x4x32x32xbf16, #tpu.memory_space<vmem>>, vector<1x1x32x32xbf16>,
    %85 = tpu.transpose %79, [1, 0] : vector<32x32xf32> -> vector<32x32xf32>
    %86 = arith.truncf %85 : vector<32x32xf32> to vector<32x32xbf16>
    %c0_49 = arith.constant 0 : index
    %c2_50 = arith.constant 2 : index
    %c0_51 = arith.constant 0 : index
    %c0_52 = arith.constant 0 : index
    %87 = vector.load %arg8[%c0_49, %c2_50, %c0_51, %c0_52] : memref<1x4x32x32xbf16, #tpu.memory_space<vmem>>, vector<1x1x32x32xbf16>
    %88 = vector.shape_cast %87 : vector<1x1x32x32xbf16> to vector<32x32xbf16>
    %89 = vector.shape_cast %86 : vector<32x32xbf16> to vector<1x1x32x32xbf16>
    tpu.vector_store %arg8[%c0_49, %c2_50, %c0_51, %c0_52], %89 {strides = array<i32>} : memref<1x4x32x32xbf16, #tpu.memory_space<vmem>>, vector<1x1x32x32xbf16>,
    %90 = arith.truncf %79 : vector<32x32xf32> to vector<32x32xbf16>
    %c0_53 = arith.constant 0 : index
    %c2_54 = arith.constant 2 : index
    %c0_55 = arith.constant 0 : index
    %c0_56 = arith.constant 0 : index
    %91 = vector.load %arg9[%c0_53, %c2_54, %c0_55, %c0_56] : memref<1x4x32x32xbf16, #tpu.memory_space<vmem>>, vector<1x1x32x32xbf16>
    %92 = vector.shape_cast %91 : vector<1x1x32x32xbf16> to vector<32x32xbf16>
    %93 = vector.shape_cast %90 : vector<32x32xbf16> to vector<1x1x32x32xbf16>
    tpu.vector_store %arg9[%c0_53, %c2_54, %c0_55, %c0_56], %93 {strides = array<i32>} : memref<1x4x32x32xbf16, #tpu.memory_space<vmem>>, vector<1x1x32x32xbf16>,
    %94 = arith.truncf %80 : vector<32x32xf32> to vector<32x32xbf16>
    %c0_57 = arith.constant 0 : index
    %c2_58 = arith.constant 2 : index
    %c0_59 = arith.constant 0 : index
    %c0_60 = arith.constant 0 : index
    %95 = vector.load %arg10[%c0_57, %c2_58, %c0_59, %c0_60] : memref<1x4x32x32xbf16, #tpu.memory_space<vmem>>, vector<1x1x32x32xbf16>
    %96 = vector.shape_cast %95 : vector<1x1x32x32xbf16> to vector<32x32xbf16>
    %97 = vector.shape_cast %94 : vector<32x32xbf16> to vector<1x1x32x32xbf16>
    tpu.vector_store %arg10[%c0_57, %c2_58, %c0_59, %c0_60], %97 {strides = array<i32>} : memref<1x4x32x32xbf16, #tpu.memory_space<vmem>>, vector<1x1x32x32xbf16>,
    %98 = vector.extract_strided_slice %37 {offsets = [0, 96], sizes = [32, 32], strides = [1, 1]} : vector<32x384xf32> to vector<32x32xf32>
    %99 = vector.extract_strided_slice %37 {offsets = [0, 224], sizes = [32, 32], strides = [1, 1]} : vector<32x384xf32> to vector<32x32xf32>
    %100 = vector.extract_strided_slice %37 {offsets = [0, 352], sizes = [32, 32], strides = [1, 1]} : vector<32x384xf32> to vector<32x32xf32>
    %101 = arith.truncf %98 : vector<32x32xf32> to vector<32x32xbf16>
    %c0_61 = arith.constant 0 : index
    %c3 = arith.constant 3 : index
    %c0_62 = arith.constant 0 : index
    %c0_63 = arith.constant 0 : index
    %102 = vector.load %arg7[%c0_61, %c3, %c0_62, %c0_63] : memref<1x4x32x32xbf16, #tpu.memory_space<vmem>>, vector<1x1x32x32xbf16>
    %103 = vector.shape_cast %102 : vector<1x1x32x32xbf16> to vector<32x32xbf16>
    %104 = vector.shape_cast %101 : vector<32x32xbf16> to vector<1x1x32x32xbf16>
    tpu.vector_store %arg7[%c0_61, %c3, %c0_62, %c0_63], %104 {strides = array<i32>} : memref<1x4x32x32xbf16, #tpu.memory_space<vmem>>, vector<1x1x32x32xbf16>,
    %105 = tpu.transpose %99, [1, 0] : vector<32x32xf32> -> vector<32x32xf32>
    %106 = arith.truncf %105 : vector<32x32xf32> to vector<32x32xbf16>
    %c0_64 = arith.constant 0 : index
    %c3_65 = arith.constant 3 : index
    %c0_66 = arith.constant 0 : index
    %c0_67 = arith.constant 0 : index
    %107 = vector.load %arg8[%c0_64, %c3_65, %c0_66, %c0_67] : memref<1x4x32x32xbf16, #tpu.memory_space<vmem>>, vector<1x1x32x32xbf16>
    %108 = vector.shape_cast %107 : vector<1x1x32x32xbf16> to vector<32x32xbf16>
    %109 = vector.shape_cast %106 : vector<32x32xbf16> to vector<1x1x32x32xbf16>
    tpu.vector_store %arg8[%c0_64, %c3_65, %c0_66, %c0_67], %109 {strides = array<i32>} : memref<1x4x32x32xbf16, #tpu.memory_space<vmem>>, vector<1x1x32x32xbf16>,
    %110 = arith.truncf %99 : vector<32x32xf32> to vector<32x32xbf16>
    %c0_68 = arith.constant 0 : index
    %c3_69 = arith.constant 3 : index
    %c0_70 = arith.constant 0 : index
    %c0_71 = arith.constant 0 : index
    %111 = vector.load %arg9[%c0_68, %c3_69, %c0_70, %c0_71] : memref<1x4x32x32xbf16, #tpu.memory_space<vmem>>, vector<1x1x32x32xbf16>
    %112 = vector.shape_cast %111 : vector<1x1x32x32xbf16> to vector<32x32xbf16>
    %113 = vector.shape_cast %110 : vector<32x32xbf16> to vector<1x1x32x32xbf16>
    tpu.vector_store %arg9[%c0_68, %c3_69, %c0_70, %c0_71], %113 {strides = array<i32>} : memref<1x4x32x32xbf16, #tpu.memory_space<vmem>>, vector<1x1x32x32xbf16>,
    %114 = arith.truncf %100 : vector<32x32xf32> to vector<32x32xbf16>
    %c0_72 = arith.constant 0 : index
    %c3_73 = arith.constant 3 : index
    %c0_74 = arith.constant 0 : index
    %c0_75 = arith.constant 0 : index
    %115 = vector.load %arg10[%c0_72, %c3_73, %c0_74, %c0_75] : memref<1x4x32x32xbf16, #tpu.memory_space<vmem>>, vector<1x1x32x32xbf16>
    %116 = vector.shape_cast %115 : vector<1x1x32x32xbf16> to vector<32x32xbf16>
    %117 = vector.shape_cast %114 : vector<32x32xbf16> to vector<1x1x32x32xbf16>
    tpu.vector_store %arg10[%c0_72, %c3_73, %c0_74, %c0_75], %117 {strides = array<i32>} : memref<1x4x32x32xbf16, #tpu.memory_space<vmem>>, vector<1x1x32x32xbf16>,
    return
  }
  func.func @transform_0(%arg0: i32, %arg1: i32) -> (i32, i32, i32) {
    %c0_i32 = arith.constant 0 : i32
    %c0_i32_0 = arith.constant 0 : i32
    return %arg0, %arg1, %c0_i32 : i32, i32, i32
  }
  func.func @transform_1(%arg0: i32, %arg1: i32) -> (i32, i32) {
    %c0_i32 = arith.constant 0 : i32
    %c0_i32_0 = arith.constant 0 : i32
    %c0_i32_1 = arith.constant 0 : i32
    return %c0_i32, %c0_i32_0 : i32, i32
  }
  func.func @transform_2(%arg0: i32, %arg1: i32) -> (i32, i32) {
    %c0_i32 = arith.constant 0 : i32
    %c0_i32_0 = arith.constant 0 : i32
    %c0_i32_1 = arith.constant 0 : i32
    return %c0_i32, %c0_i32_0 : i32, i32
  }
  func.func @transform_3(%arg0: i32, %arg1: i32) -> (i32, i32) {
    %c0_i32 = arith.constant 0 : i32
    %c0_i32_0 = arith.constant 0 : i32
    %c0_i32_1 = arith.constant 0 : i32
    return %c0_i32, %c0_i32_0 : i32, i32
  }
  func.func @transform_4(%arg0: i32, %arg1: i32) -> (i32, i32) {
    %c0_i32 = arith.constant 0 : i32
    %c0_i32_0 = arith.constant 0 : i32
    %c0_i32_1 = arith.constant 0 : i32
    return %c0_i32, %c0_i32_0 : i32, i32
  }
  func.func @transform_5(%arg0: i32, %arg1: i32) -> (i32, i32, i32, i32) {
    %c0_i32 = arith.constant 0 : i32
    %c0_i32_0 = arith.constant 0 : i32
    %c0_i32_1 = arith.constant 0 : i32
    return %arg0, %c0_i32, %arg1, %c0_i32_0 : i32, i32, i32, i32
  }
  func.func @transform_6(%arg0: i32, %arg1: i32) -> (i32, i32, i32, i32) {
    %c0_i32 = arith.constant 0 : i32
    %c0_i32_0 = arith.constant 0 : i32
    %c0_i32_1 = arith.constant 0 : i32
    return %arg0, %c0_i32, %c0_i32_0, %arg1 : i32, i32, i32, i32
  }
  func.func @transform_7(%arg0: i32, %arg1: i32) -> (i32, i32, i32, i32) {
    %c0_i32 = arith.constant 0 : i32
    %c0_i32_0 = arith.constant 0 : i32
    %c0_i32_1 = arith.constant 0 : i32
    return %arg0, %c0_i32, %arg1, %c0_i32_0 : i32, i32, i32, i32
  }
  func.func @transform_8(%arg0: i32, %arg1: i32) -> (i32, i32, i32, i32) {
    %c0_i32 = arith.constant 0 : i32
    %c0_i32_0 = arith.constant 0 : i32
    %c0_i32_1 = arith.constant 0 : i32
    return %arg0, %c0_i32, %arg1, %c0_i32_0 : i32, i32, i32, i32
  }
}

</mosaic_0001>

<bundles_post_ra>
// kernel: tpu_custom_call.1
= control target key start
LH: loop header
LB: loop body
LE: loop exit
PB: predicated region body
PF: predicated region fallthrough
CT: control target
= control target key end

     0   :  { %s2728_s0 = inlined_call_operand.hbm [shape: f32[2,32,128], index: 0, kind: input, shape index: {}]   ;;  %s2729_s1 = inlined_call_operand.vmem [shape: f32[1,128], index: 1, kind: input, shape index: {}]   ;;  %s2730_s2 = inlined_call_operand.vmem [shape: f32[1,128], index: 2, kind: input, shape index: {}]   ;;  %s2731_s3 = inlined_call_operand.hbm [shape: bf16[128,384], index: 3, kind: input, shape index: {}]   ;;  %s2732_s4 = inlined_call_operand.vmem [shape: f32[1,384], index: 4, kind: input, shape index: {}]   ;;  %s2733_s5 = inlined_call_operand.hbm [shape: bf16[2,4,32,32], index: 5, kind: output, shape index: {0}]   ;;  %s2734_s6 = inlined_call_operand.hbm [shape: bf16[2,4,32,32], index: 6, kind: output, shape index: {1}]   ;;  %s2735_s7 = inlined_call_operand.hbm [shape: bf16[2,4,32,32], index: 7, kind: output, shape index: {2}]   ;;  %s2736_s8 = inlined_call_operand.hbm [shape: bf16[2,4,32,32], index: 8, kind: output, shape index: {3}]  }
   0x1   :  { %2743 = sst [smem:[#allocation22_spill]] %s2731_s3 }
   0x2   :  { %14 = vsyncpa [#allocation3], 0 }
   0x3   :  { %16 = vsyncpa [#allocation3 + $0x1], 0 }
   0x4   :  { %17 = vsyncpa [#allocation6], 0 }
   0x5   :  { %18 = vsyncpa [#allocation4], 0 }
   0x6   :  { %20 = vsyncpa [#allocation4 + $0x1], 0 }
   0x7   :  { %21 = vsyncpa [#allocation9], 0 }
   0x8   :  { %23 = vsyncpa [#allocation9 + $0x1], 0 }
   0x9   :  { %24 = vsyncpa [#allocation12], 0 }
   0xa   :  { %26 = vsyncpa [#allocation12 + $0x1], 0  ;;  %s2143_s27 = smov 0   ;;  %s2145_s28 = smov 0  }
   0xb   :  { %s2147_s29 = smov 0   ;;  %s2149_s30 = smov 0  }
   0xc   :  { %s2151_s9 = smov 0   ;;  %s2153_s10 = smov 0  }
   0xd LB: > { %2744 = sst [smem:[#allocation18_spill]] %s2061_s27  ;;  %s2174_s11 = sadd.s32 4294967295, %s2081_s10   ;;  %s2081_s10 = sphi %s2153_s10, %s32_s10   ;;  %s2077_s9 = sphi %s2151_s9, %s2766_s9   ;;  %s2073_s30 = sphi %s2149_s30, %s2765_s30   ;;  %s2069_s29 = sphi %s2147_s29, %s2769_s29   ;;  %s2065_s28 = sphi %s2145_s28, %s2768_s28   ;;  %s2061_s27 = sphi %s2143_s27, %s2767_s27  }
   0xe   : > { %2745 = sst [smem:[#allocation19_spill]] %s2077_s9  ;;  %s2737_s12 = sadd.s32 4294967294, %s2081_s10  }
   0xf   : > { %p66_p0 = scmp.ne.s32.totalorder %s2065_s28, %s2061_s27  ;;  %p2742_p1 = scmp.eq.s32.totalorder %s2174_s11, 0 }
  0x10   : > { %p182_p3 = scmp.eq.s32.totalorder %s2737_s12, 1  ;;  %p1497_p5 = scmp.ge.s32.totalorder %s2081_s10, 1 }
  0x11   : > { %p2185_p4 = por %p2742_p1, %p66_p0  ;;  %p273_p7 = scmp.lt.s32.totalorder %s2081_s10, 3 }
  0x12   : > { %p2190_p6 = por %p182_p3, %p66_p0  ;;  %s2083_s16 = smov [#allocation5]  }
  0x13   : > { %p2195_p8 = pnand %p1497_p5, %p273_p7  ;;  %s291_s17 = sshll.u32 %s2083_s16, 4  ;;  %s292_s17 = int_to_ptr.vmem [resolvable:$true] %s291_s17 }
  0x14   : > { %s2747_s14 = scalar_select %p2190_p6, 1, 0 }
  0x15   : > { %p1703_p9 = pneg %p2195_p8  ;;  %s44_s19 = sadd.s32 1, %s2077_s9 }
  0x16   : > { %2748 = sst [smem:[#allocation20_spill]] %s2747_s14  ;;  %s1868_s20 = scalar_lea.vmem %s292_s17, 3072 }
  0x17   : > { %p2204_p11 = pnand %p1703_p9, %p2742_p1  ;;  %p1869_p13 = scmp.ne.s32.totalorder %s292_s17, %s1868_s20 }
  0x18   : > { %p1876_p5 = scmp.lt.s32.totalorder %s292_s17, %s292_s17  ;;  %p1877_p7 = scmp.lt.s32.totalorder %s1868_s20, %s1868_s20 }
  0x19   : > { %p1859_p12 = pneg %p2204_p11 }
  0x1a   : > { %p1878_p2 = por %p1877_p7, %p1876_p5 }
  0x1b   : > { %p1871_p0 = pnand %p1869_p13, %p1859_p12 }
  0x1d   : > { %p1872_p3 = pneg %p1871_p0 }
  0x1f   : > { %p1879_p6 = pnand %p1878_p2, %p1872_p3 }
  0x21   : > { %1882 = shalt.err (!%p1879_p6)
}
  0x22   : > { %s2084_s21 = smov 192   ;;  %s2085_s22 = smov 12  }
  0x23   : > { %s2751_s3 = sld [smem:[#allocation22_spill]]  ;;  %p46_p2 = scmp.ge.s32.totalorder %s44_s19, 2 }
  0x24   : > { %s53_s25 = sadd.s32 1, %s2069_s29  ;;  %p60_p6 = scmp.ne.s32.totalorder %s2069_s29, %s2065_s28 }
  0x25   : > { %p61_p9 = scmp.eq.s32.totalorder %s2081_s10, 0  ;;  %s2771_s19 = smov (%p46_p2, %s44_s19), 0 }
  0x26   : > { %2752 = sst [smem:[#allocation21_spill]] %s2771_s19  ;;  %p2754_p13 = scmp.eq.s32.totalorder %s2174_s11, 1 }
  0x27   : > { %p2222_p12 = por %p61_p9, %p60_p6  ;;  %s48_s18 = ssub.s32 %s2077_s9, %s2771_s19 }
  0x28   : > { %p2228_p0 = por %p2754_p13, %p60_p6  ;;  %p1725_p3 = scmp.lt.s32.totalorder %s2081_s10, 2 }
  0x29   : > { %1706 = dma.hbm_to_vmem [thread:$0]  (!%p2204_p11), %s2751_s3, 3072, %s292_s17, [#allocation6], %s2084_s21, %s2084_s21, %s2085_s22  }
  0x2a   : > { %p51_p11 = scmp.eq.s32.totalorder %s48_s18, 0  ;;  %s308_s17 = sand.u32 1, %s2069_s29  }
  0x2b   : > { %s1500_s20 = sshll.u32 %s308_s17, 5  ;;  %s1626_s22 = sshll.u32 %s2077_s9, 9 }
  0x2c   : > { %s2237_s21 = scalar_select %p51_p11, %s2069_s29, %s53_s25  }
  0x2d   : > { %s320_s12 = scalar_lea.hbm %s2728_s0, %s1626_s22  ;;  %s312_s3 = scalar_lea.vmem [#allocation2], %s1500_s20 }
  0x2e   : > { %s321_s14 = sshll.u32 %s312_s3, 4  ;;  %p2245_p5 = pnand %p1725_p3, %p2222_p12  ;;  %s322_s14 = int_to_ptr.vmem [resolvable:$true] %s321_s14 }
  0x2f   : > { %s309_s19 = scalar_lea.sflag [#allocation3], %s308_s17  ;;  %s1896_s18 = scalar_lea.vmem %s322_s14, 512 }
  0x30   : > { %p1885_p7 = pneg %p2245_p5  ;;  %p1897_p2 = scmp.ne.s32.totalorder %s322_s14, %s1896_s18 }
  0x31   : > { %s2086_s25 = smov [#allocation2]  }
  0x32   : > { %p1899_p6 = pnand %p1897_p2, %p1885_p7  ;;  %s1901_s9 = sshll.u32 %s2086_s25, 4  ;;  %s1902_s9 = int_to_ptr.vmem [resolvable:$false] %s1901_s9 }
  0x33   : > { %s1903_s22 = scalar_lea.vmem %s1902_s9, 1024  ;;  %p1904_p13 = scmp.lt.s32.totalorder %s322_s14, %s1902_s9 }
  0x34   : > { %p1900_p9 = pneg %p1899_p6  ;;  %p1905_p11 = scmp.lt.s32.totalorder %s1903_s22, %s1896_s18 }
  0x36   : > { %p1906_p10 = por %p1905_p11, %p1904_p13 }
  0x38   : > { %p1907_p1 = pnand %p1906_p10, %p1900_p9 }
  0x3a   : > { %1910 = shalt.err (!%p1907_p1)
}
  0x3b   : > { %s2087_s3 = smov 128   ;;  %s2088_s26 = smov 8  }
  0x3c   : > { %1710 = dma.hbm_to_vmem [thread:$0]  (!%p2245_p5), %s320_s12, 512, %s322_s14, %s309_s19, %s2087_s3, %s2087_s3, %s2088_s26  }
  0x3d   : > { %333 = sbr.rel (%p2195_p8) target bundleno = 1030 (0x406), region = 40  ;;  %s2256_s17 = sand.u32 (!%p2195_p8), 1, %s2065_s28  }
  0x3e   : > { %s1504_s20 = sshll.u32 (!%p2195_p8), %s2256_s17, 5  ;;  %s336_s9 = scalar_lea.sflag (!%p2195_p8), [#allocation3], %s2256_s17 }
  0x3f   : > { %s339_s23 = scalar_lea.vmem (!%p2195_p8), [#allocation2], %s1504_s20 }
  0x42   : > { %2040 = dma.done.wait (%p2185_p4), %s336_s9, 512  }
  0x43   : > { %2042 = vsyncadd (%p2185_p4), %s336_s9, 4294966784  ;;  %p2757_p1 = scmp.eq.s32.totalorder %s2174_s11, 0 }
  0x45   : > { %2044 = dma.done.wait (%p2757_p1), [#allocation6], 3072   ;;  %p2758_p10 = pmov %p2757_p1 }
  0x46   : > { %v396_v0 = vld [vmem:[%s339_s23] sm:$0xff]  ;;  %v398_v1 = vld [vmem:[%s339_s23 + $0x10] sm:$0xff]  ;;  %v397_v2 = vld [vmem:[%s339_s23 + $0x8] sm:$0xff]  ;;  %v2089_v39 = vmov 0   ;;  %s2298_s24 = sshll.u32 %s2256_s17, 6  ;;  %vm764_vm0 = vcmask 257024  }
  0x47   : > { %2046 = vsyncadd (%p2758_p10), [#allocation6], 4294964224  ;;  %402 = vadd.xlane.f32.xlu0 %v396_v0  ;;  %406 = vadd.xlane.f32.xlu1 %v398_v1  ;;  %v399_v3 = vld [vmem:[%s339_s23 + $0x18] sm:$0xff]  ;;  %v1819_v5 = vld [vmem:[#allocation5 + $0xa8] ss:$12 sps:$4 sm:$0xff]   ;;  %s2303_s18 = scalar_lea.vmem [#allocation7], %s2298_s24 }
  0x48   : > { %v1817_v4 = vld [vmem:[#allocation5 + $0xac] ss:$12 sps:$4 sm:$0xff]   ;;  %v1820_v22 = vld [vmem:[#allocation5 + $0x94] ss:$12 sps:$4 sm:$0xff]   ;;  %v1822_v23 = vld [vmem:[#allocation5 + $0xb0] ss:$12 sps:$4 sm:$0xff]   ;;  %678 = vmatprep.mubr.bf16.mxu0 %v2089_v39 }
  0x49   : > { %646 = vmatprep.subr.bf16.mxu0 %v1817_v4  ;;  %v1823_v24 = vld [vmem:[#allocation5 + $0x90] ss:$12 sps:$4 sm:$0xff]   ;;  %1669 = vmatprep.subr.bf16.mxu1 %v1822_v23  ;;  %v1826_v26 = vld [vmem:[#allocation5 + $0x98] ss:$12 sps:$4 sm:$0xff]   ;;  %v1830_v29 = vld [vmem:[#allocation5 + $0x80] ss:$12 sps:$4 sm:$0xff]  }
  0x4a   : > { %647 = vmatpush1.bf16.msra.mxu0 %v1819_v5  ;;  %1670 = vmatpush3.bf16.msra.mxu1 %v1822_v23  ;;  %v1824_v25 = vld [vmem:[#allocation5 + $0x7c] ss:$12 sps:$4 sm:$0xff]   ;;  %v1827_v27 = vld [vmem:[#allocation5 + $0x78] ss:$12 sps:$4 sm:$0xff]   ;;  %v1831_v30 = vld [vmem:[#allocation5 + $0x60] ss:$12 sps:$4 sm:$0xff]  }
  0x4b   : > { %404 = vadd.xlane.f32.xlu0 %v397_v2  ;;  %408 = vadd.xlane.f32.xlu1 %v399_v3  ;;  %v1828_v28 = vld [vmem:[#allocation5 + $0x64] ss:$12 sps:$4 sm:$0xff]   ;;  %v1832_v31 = vld [vmem:[#allocation5 + $0x4c] ss:$12 sps:$4 sm:$0xff]   ;;  %v1834_v32 = vld [vmem:[#allocation5 + $0x68] ss:$12 sps:$4 sm:$0xff]  }
  0x4c   : > { %648 = vmatprep.subr.bf16.mxu0 %v1820_v22  ;;  %1671 = vmatprep.subr.bf16.mxu1 %v1826_v26  ;;  %v1835_v33 = vld [vmem:[#allocation5 + $0x48] ss:$12 sps:$4 sm:$0xff]   ;;  %v1838_v35 = vld [vmem:[#allocation5 + $0x50] ss:$12 sps:$4 sm:$0xff]   ;;  %v1842_v38 = vld [vmem:[#allocation5 + $0x38] ss:$12 sps:$4 sm:$0xff]  }
  0x4d   : > { %v1836_v34 = vld [vmem:[#allocation5 + $0x34] ss:$12 sps:$4 sm:$0xff]   ;;  %v1839_v36 = vld [vmem:[#allocation5 + $0x30] ss:$12 sps:$4 sm:$0xff]   ;;  %v1843_v40 = vld [vmem:[#allocation5 + $0x18] ss:$12 sps:$4 sm:$0xff]  }
  0x4e   : > { %649 = vmatpush1.bf16.msra.mxu0 %v1823_v24  ;;  %1672 = vmatpush3.bf16.msra.mxu1 %v1826_v26  ;;  %v1840_v37 = vld [vmem:[#allocation5 + $0x1c] ss:$12 sps:$4 sm:$0xff]   ;;  %v1844_v41 = vld [vmem:[#allocation5 + $0x4] ss:$12 sps:$4 sm:$0xff]   ;;  %v1846_v42 = vld [vmem:[#allocation5 + $0x20] ss:$12 sps:$4 sm:$0xff]  }
  0x4f   : > { %650 = vmatprep.subr.bf16.mxu0 %v1824_v25  ;;  %1673 = vmatprep.subr.bf16.mxu1 %v1830_v29  ;;  %v1847_v43 = vld [vmem:[#allocation5] ss:$12 sps:$4 sm:$0xff]   ;;  %v1848_v44 = vld [vmem:[#allocation5 + $0x8] ss:$12 sps:$4 sm:$0xff]   ;;  %s2090_s25 = smov 32   ;;  %s2091_s22 = smov 96  }
  0x50   : > { %v1510_v59 = vld [vmem:[%s2729_s1] ss:$0 sm:$0xff]  ;;  %s2318_s3 = scalar_lea.vmem [#allocation10], %s2298_s24  ;;  %s2326_s26 = scalar_lea.vmem [#allocation11], %s2298_s24 }
  0x51   : > { %s2092_s20 = smov 64   ;;  %s2503_s9 = scalar_lea.vmem [#allocation8], %s2298_s24 }
  0x52   : > { %651 = vmatpush1.bf16.msra.mxu0 %v1827_v27  ;;  %1674 = vmatpush3.bf16.msra.mxu1 %v1830_v29  ;;  %s2534_s23 = sshll.u32 %s2073_s30, 10  ;;  %s1244_s14 = sshll.u32 %s2303_s18, 4  ;;  %s2545_s14 = int_to_ptr.vmem [resolvable:$true] %s1244_s14 }
  0x53   : > { %652 = vmatprep.subr.bf16.mxu0 %v1828_v28  ;;  %1675 = vmatprep.subr.bf16.mxu1 %v1834_v32  ;;  %s2542_s13 = scalar_lea.hbm %s2733_s5, %s2534_s23  ;;  %s1911_s15 = scalar_lea.vmem %s2545_s14, 1024 }
  0x54   : > { %p1912_p4 = scmp.ne.s32.totalorder %s2545_s14, %s1911_s15  ;;  %s2093_s19 = smov [#allocation7]  }
  0x55   : > { %s1915_s24 = sshll.u32 %s2093_s19, 4  ;;  %s1916_s24 = int_to_ptr.vmem [resolvable:$false] %s1915_s24 }
  0x56   : > { %653 = vmatpush1.bf16.msra.mxu0 %v1831_v30  ;;  %1676 = vmatpush3.bf16.msra.mxu1 %v1834_v32  ;;  %p1913_p8 = pnand %p1912_p4, %p2228_p0  ;;  %p1918_p3 = scmp.lt.s32.totalorder %s2545_s14, %s1916_s24 }
  0x57   : > { %654 = vmatprep.subr.bf16.mxu0 %v1832_v31  ;;  %1677 = vmatprep.subr.bf16.mxu1 %v1838_v35 }
  0x58   : > { %p1914_p12 = pneg %p1913_p8 }
  0x5a   : > { %655 = vmatpush1.bf16.msra.mxu0 %v1835_v33  ;;  %1678 = vmatpush3.bf16.msra.mxu1 %v1838_v35 }
  0x5b   : > { %656 = vmatprep.subr.bf16.mxu0 %v1836_v34  ;;  %1679 = vmatprep.subr.bf16.mxu1 %v1842_v38 }
  0x5e   : > { %657 = vmatpush1.bf16.msra.mxu0 %v1839_v36  ;;  %1680 = vmatpush3.bf16.msra.mxu1 %v1842_v38 }
  0x5f   : > { %658 = vmatprep.subr.bf16.mxu0 %v1840_v37  ;;  %1681 = vmatprep.subr.bf16.mxu1 %v1846_v42 }
  0x62   : > { %659 = vmatpush1.bf16.msra.mxu0 %v1843_v40  ;;  %1682 = vmatpush3.bf16.msra.mxu1 %v1846_v42 }
  0x63   : > { %660 = vmatprep.subr.bf16.mxu0 %v1844_v41  ;;  %1683 = vmatprep.subr.bf16.mxu1 %v1848_v44 }
  0x66   : > { %661 = vmatpush1.bf16.msra.mxu0 %v1847_v43  ;;  %1684 = vmatpush3.bf16.msra.mxu1 %v1848_v44 }
  0xd0   : > { %v403_v6 = vpop.xlane.xlu0 %402  ;;  %v407_v7 = vpop.xlane.xlu1 %406 }
  0xd1   : > { %v411_v8 = vmul.f32 0.0078125, %v403_v6  ;;  %v413_v9 = vmul.f32 0.0078125, %v407_v7 }
  0xd3   : > { %v2268_v10 = vsub.f32 %v396_v0, %v411_v8  ;;  %v2270_v11 = vsub.f32 %v398_v1, %v413_v9  ;;  %v1511_v0 = vld [vmem:[%s2730_s2] ss:$0 sm:$0xff] }
  0xd4   : > { %v405_v12 = vpop.xlane.xlu0 %404  ;;  %v409_v13 = vpop.xlane.xlu1 %408 }
  0xd5   : > { %v412_v14 = vmul.f32 0.0078125, %v405_v12  ;;  %v419_v15 = vmul.f32 %v2268_v10, %v2268_v10  ;;  %v414_v16 = vmul.f32 0.0078125, %v409_v13  ;;  %v421_v19 = vmul.f32 %v2270_v11, %v2270_v11 }
  0xd7   : > { %v2274_v17 = vsub.f32 %v397_v2, %v412_v14  ;;  %423 = vadd.xlane.f32.xlu0 %v419_v15  ;;  %v2276_v18 = vsub.f32 %v399_v3, %v414_v16  ;;  %v503_v14 = vlaneseq  ;;  %v501_v16 = vld [vmem:[%s2732_s4] sm:$0x7] }
  0xd9   : > { %v420_v20 = vmul.f32 %v2274_v17, %v2274_v17  ;;  %v422_v21 = vmul.f32 %v2276_v18, %v2276_v18 }
  0xdb   : > { %427 = vadd.xlane.f32.xlu0 %v421_v19  ;;  %425 = vadd.xlane.f32.xlu1 %v420_v20 }
  0xdf   : > { %429 = vadd.xlane.f32.xlu1 %v422_v21 }
 0x160   : > { %v424_v45 = vpop.xlane.xlu0 %423 }
 0x161   : > { %v431_v46 = vmul.f32 0.0078125, %v424_v45 }
 0x163   : > { %v435_v47 = vadd.f32 1e-05, %v431_v46 }
 0x164   : > { %v426_v48 = vpop.xlane.xlu1 %425  ;;  %v428_v49 = vpop.xlane.xlu0 %427 }
 0x165   : > { %1849 = vrsqrt.f32 %v435_v47  ;;  %v432_v50 = vmul.f32 0.0078125, %v426_v48  ;;  %v433_v51 = vmul.f32 0.0078125, %v428_v49 }
 0x167   : > { %v436_v52 = vadd.f32 1e-05, %v432_v50  ;;  %v437_v53 = vadd.f32 1e-05, %v433_v51 }
 0x168   : > { %v430_v54 = vpop.xlane.xlu1 %429 }
 0x169   : > { %1851 = vrsqrt.f32 %v436_v52  ;;  %v434_v55 = vmul.f32 0.0078125, %v430_v54 }
 0x16a   : > { %1853 = vrsqrt.f32 %v437_v53 }
 0x16b   : > { %v438_v56 = vadd.f32 1e-05, %v434_v55 }
 0x16d   : > { %1855 = vrsqrt.f32 %v438_v56 }
 0x172   : > { %v1850_v57 = vpop.eup %1849 }
 0x173   : > { %v443_v58 = vmul.f32 %v1850_v57, %v2268_v10 }
 0x175   : > { %v453_v63 = vmul.f32 %v1510_v59, %v443_v58 }
 0x176   : > { %v1852_v60 = vpop.eup %1851 }
 0x177   : > { %v1854_v61 = vpop.eup %1853  ;;  %v444_v62 = vmul.f32 %v1852_v60, %v2274_v17  ;;  %v463_v4 = vadd.f32 %v1511_v0, %v453_v63 }
 0x178   : > { %v445_v1 = vmul.f32 %v1854_v61, %v2270_v11  ;;  %v504_v11 = vshrl.u32 %v503_v14, 7 }
 0x179   : > { %v454_v2 = vmul.f32 %v1510_v59, %v444_v62 }
 0x17a   : > { %v1856_v3 = vpop.eup %1855  ;;  %v455_v7 = vmul.f32 %v1510_v59, %v445_v1  ;;  %v505_v15 = vsub.s32 0, %v504_v11  ;;  %v509_v17 = vsub.s32 1, %v504_v11  ;;  %v513_v19 = vsub.s32 2, %v504_v11 }
 0x17b   : > { %v464_v5 = vadd.f32 %v1511_v0, %v454_v2  ;;  %v446_v6 = vmul.f32 %v1856_v3, %v2276_v18 }
 0x17c   : > { %v465_v10 = vadd.f32 %v1511_v0, %v455_v7  ;;  %v506_v18 = vrot.slane %v501_v16, %v505_v15  ;;  %v510_v20 = vrot.slane %v501_v16, %v509_v17  ;;  %v514_v23 = vrot.slane %v501_v16, %v513_v19 }
 0x17d   : > { %v467_v8 = vpack.c.bf16 %v464_v5, %v463_v4  ;;  %v456_v9 = vmul.f32 %v1510_v59, %v446_v6 }
 0x17f   : > { %679 = vmatmul.mubr.bf16.vlgmr.msra.gmra.mxu0 %v467_v8  ;;  %1685 = vmatprep.mubr.bf16.mxu1 %v467_v8  ;;  %v466_v12 = vadd.f32 %v1511_v0, %v456_v9 }
 0x180   : > { %688 = vmatprep.mubr.bf16.mxu0 %v2089_v39 }
 0x181   : > { %v468_v13 = vpack.c.bf16 %v466_v12, %v465_v10 }
 0x183   : > { %1686 = vmatmul.mubr.bf16.vlgmr.msra.gmra.mxu1 %v468_v13 }
 0x187   : > { %689 = vmatmul.mubr.bf16.gmra.mxu0 %v468_v13 }
 0x23f   : > { %v680_v21 = vpop.f32.mrf.mxu0 }
 0x240   : > { %v681_v22 = vadd.f32 %v680_v21, %v506_v18 }
 0x241   : > { %v682_v24 = vpop.f32.mrf.mxu0 }
 0x242   : > { %v1627_v25 = vpack.c.bf16 %v681_v22, %v681_v22  ;;  %v2300_v26 = vadd.f32 %v682_v24, %v510_v20 }
 0x243   : > { %v684_v27 = vpop.f32.mrf.mxu0  ;;  %v1687_v28 = vpop.f32.mrf.mxu1 }
 0x244   : > { %765 = vst.msk [vmem:[%s2303_s18] sm:$0xf] %vm764_vm0, %v1627_v25  ;;  %v685_v29 = vadd.f32 %v684_v27, %v506_v18  ;;  %v742_v30 = vadd.f32 %v1687_v28, %v514_v23  ;;  %1097 = vrot.lane.b32.xlu0 %v1627_v25, %s2090_s25  ;;  %861 = vrot.lane.b32.xlu1 %v1627_v25, %s2091_s22 }
 0x245   : > { %v2311_v31 = vpack.c.bf16 %v2300_v26, %v2300_v26  ;;  %v686_v32 = vpop.f32.mrf.mxu0  ;;  %v733_v33 = vpop.f32.mrf.mxu1 }
 0x246   : > { %v1628_v34 = vpack.c.bf16 %v685_v29, %v685_v29  ;;  %v2313_v35 = vpack.c.bf16 %v742_v30, %v742_v30  ;;  %v2315_v36 = vadd.f32 %v686_v32, %v510_v20  ;;  %v734_v37 = vadd.f32 %v733_v33, %v514_v23 }
 0x247   : > { %837 = vst.msk [vmem:[%s2318_s3] sm:$0xf] %vm764_vm0, %v2311_v31  ;;  %v690_v38 = vpop.f32.mrf.mxu0  ;;  %v1688_v39 = vpop.f32.mrf.mxu1 }
 0x248   : > { %766 = vst.msk [vmem:[%s2303_s18 + $0x4] sm:$0xf] %vm764_vm0, %v1628_v34  ;;  %859 = vst.msk [vmem:[%s2326_s26 + $0x8] sm:$0xf] %vm764_vm0, %v2313_v35  ;;  %v2331_v40 = vpack.c.bf16 %v734_v37, %v734_v37  ;;  %v691_v41 = vadd.f32 %v690_v38, %v506_v18  ;;  %v745_v42 = vadd.f32 %v1688_v39, %v514_v23  ;;  %981 = vrot.lane.b32.xlu1 %v1627_v25, %s2092_s20 }
 0x249   : > { %968 = vrot.lane.b32.xlu0 %v2313_v35, %s2091_s22  ;;  %v692_v43 = vpop.f32.mrf.mxu0  ;;  %v736_v44 = vpop.f32.mrf.mxu1  ;;  %v2338_v45 = vpack.c.bf16 %v2315_v36, %v2315_v36  ;;  %v1787_v57 = vpack.i.bf16 %v2315_v36, %v2300_v26 }
 0x24a   : > { %857 = vst.msk [vmem:[%s2326_s26] sm:$0xf] %vm764_vm0, %v2331_v40  ;;  %v2343_v46 = vpack.c.bf16 %v691_v41, %v691_v41  ;;  %v2345_v47 = vpack.c.bf16 %v745_v42, %v745_v42  ;;  %v693_v48 = vadd.f32 %v692_v43, %v510_v20  ;;  %v737_v49 = vadd.f32 %v736_v44, %v514_v23 }
 0x24b   : > { %v694_v50 = vpop.f32.mrf.mxu0  ;;  %838 = vst.msk [vmem:[%s2318_s3 + $0x4] sm:$0xf] %vm764_vm0, %v2338_v45 }
 0x24c   : > { %767 = vst.msk [vmem:[%s2303_s18 + $0x8] sm:$0xf] %vm764_vm0, %v2343_v46  ;;  %860 = vst.msk [vmem:[%s2326_s26 + $0xc] sm:$0xf] %vm764_vm0, %v2345_v47  ;;  %v2356_v51 = vpack.c.bf16 %v737_v49, %v737_v49  ;;  %v695_v52 = vadd.f32 %v694_v50, %v506_v18  ;;  %863 = vrot.lane.b32.xlu1 %v1628_v34, %s2091_s22  ;;  %v2361_v53 = vpack.c.bf16 %v693_v48, %v693_v48 }
 0x24d   : > { %1084 = vrot.lane.b32.xlu0 %v2313_v35, %s2092_s20  ;;  %v696_v54 = vpop.f32.mrf.mxu0 }
 0x24e   : > { %858 = vst.msk [vmem:[%s2326_s26 + $0x4] sm:$0xf] %vm764_vm0, %v2356_v51  ;;  %v2366_v55 = vpack.c.bf16 %v695_v52, %v695_v52  ;;  %v697_v56 = vadd.f32 %v696_v54, %v510_v20  ;;  %839 = vst.msk [vmem:[%s2318_s3 + $0x8] sm:$0xf] %vm764_vm0, %v2361_v53 }
 0x250   : > { %768 = vst.msk [vmem:[%s2303_s18 + $0xc] sm:$0xf] %vm764_vm0, %v2366_v55  ;;  %1788 = vrot.lane.b32.xlu1 %v1787_v57, %s2091_s22  ;;  %v2379_v58 = vpack.c.bf16 %v697_v56, %v697_v56  ;;  %v2401_v59 = vpack.i.bf16 %v697_v56, %v693_v48 }
 0x251   : > { %947 = vrot.lane.b32.xlu0 %v2311_v31, %s2091_s22 }
 0x252   : > { %840 = vst.msk [vmem:[%s2318_s3 + $0xc] sm:$0xf] %vm764_vm0, %v2379_v58 }
 0x254   : > { %1793 = vrot.lane.b32.xlu1 %v1787_v57, %s2092_s20 }
 0x255   : > { %1063 = vrot.lane.b32.xlu0 %v2311_v31, %s2092_s20 }
 0x258   : > { %949 = vrot.lane.b32.xlu1 %v2338_v45, %s2091_s22 }
 0x259   : > { %964 = vrot.lane.b32.xlu0 %v2331_v40, %s2091_s22 }
 0x25c   : > { %865 = vrot.lane.b32.xlu1 %v2343_v46, %s2091_s22 }
 0x25d   : > { %1080 = vrot.lane.b32.xlu0 %v2331_v40, %s2092_s20 }
 0x260   : > { %985 = vrot.lane.b32.xlu1 %v2343_v46, %s2092_s20 }
 0x261   : > { %983 = vrot.lane.b32.xlu0 %v1628_v34, %s2092_s20 }
 0x264   : > { %867 = vrot.lane.b32.xlu1 %v2366_v55, %s2091_s22 }
 0x265   : > { %1798 = vrot.lane.b32.xlu0 %v1787_v57, %s2090_s25 }
 0x268   : > { %1803 = vrot.lane.b32.xlu1 %v2401_v59, %s2091_s22 }
 0x269   : > { %1099 = vrot.lane.b32.xlu0 %v1628_v34, %s2090_s25 }
 0x26c   : > { %1103 = vrot.lane.b32.xlu1 %v2366_v55, %s2090_s25 }
 0x26d   : > { %970 = vrot.lane.b32.xlu0 %v2345_v47, %s2091_s22 }
 0x271   : > { %1086 = vrot.lane.b32.xlu0 %v2345_v47, %s2092_s20 }
 0x275   : > { %1065 = vrot.lane.b32.xlu0 %v2338_v45, %s2092_s20 }
 0x279   : > { %966 = vrot.lane.b32.xlu0 %v2356_v51, %s2091_s22 }
 0x27d   : > { %1082 = vrot.lane.b32.xlu0 %v2356_v51, %s2092_s20 }
 0x281   : > { %951 = vrot.lane.b32.xlu0 %v2361_v53, %s2091_s22 }
 0x285   : > { %1067 = vrot.lane.b32.xlu0 %v2361_v53, %s2092_s20 }
 0x2a3   : > { %769 = vxpose.xlu0.b32.start [1/4] (short) (narrow) %v2300_v26, 32 }
 0x2a7   : > { %770 = vxpose.xlu0.b32.cont [2/4] (short) (narrow) %v2315_v36, 32 }
 0x2ab   : > { %771 = vxpose.xlu0.b32.cont [3/4] (short) (narrow) %v693_v48, 32 }
 0x2af   : > { %772 = vxpose.xlu0.b32.end [4/4] (short) (narrow) %v697_v56, 32 }
 0x2b6   : > { %v862_v60 = vpop.permute.xlu1 %861  ;;  %v1098_v61 = vpop.permute.xlu0 %1097 }
 0x2b7   : > { %1552 = vst.msk [vmem:[%s2303_s18 + $0x10] sm:$0xf] %vm764_vm0, %v862_v60  ;;  %1592 = vst.msk [vmem:[%s2303_s18 + $0x30] sm:$0xf] %vm764_vm0, %v1098_v61 }
 0x2ba   : > { %v982_v62 = vpop.permute.xlu1 %981 }
 0x2bb   : > { %v969_v63 = vpop.permute.xlu0 %968  ;;  %1572 = vst.msk [vmem:[%s2303_s18 + $0x20] sm:$0xf] %vm764_vm0, %v982_v62 }
 0x2bc   : > { %1570 = vst.msk [vmem:[%s2326_s26 + $0x18] sm:$0xf] %vm764_vm0, %v969_v63 }
 0x2be   : > { %v864_v0 = vpop.permute.xlu1 %863 }
 0x2bf   : > { %v1085_v1 = vpop.permute.xlu0 %1084  ;;  %1553 = vst.msk [vmem:[%s2303_s18 + $0x14] sm:$0xf] %vm764_vm0, %v864_v0 }
 0x2c0   : > { %1590 = vst.msk [vmem:[%s2326_s26 + $0x28] sm:$0xf] %vm764_vm0, %v1085_v1 }
 0x2c2   : > { %v1789_v2 = vpop.permute.xlu1 %1788 }
 0x2c3   : > { %v948_v3 = vpop.permute.xlu0 %947  ;;  %v1790_v4 = vunpack.i.l.bf16 %v1789_v2  ;;  %v1791_v7 = vunpack.i.h.bf16 %v1789_v2 }
 0x2c4   : > { %1564 = vst.msk [vmem:[%s2318_s3 + $0x10] sm:$0xf] %vm764_vm0, %v948_v3 }
 0x2c5   : > { %894 = vxpose.xlu1.b32.start [1/4] (short) (narrow) %v1790_v4, 32 }
 0x2c6   : > { %v1794_v5 = vpop.permute.xlu1 %1793 }
 0x2c7   : > { %v1064_v6 = vpop.permute.xlu0 %1063  ;;  %v1795_v23 = vunpack.i.l.bf16 %v1794_v5  ;;  %v1796_v25 = vunpack.i.h.bf16 %v1794_v5 }
 0x2c8   : > { %1584 = vst.msk [vmem:[%s2318_s3 + $0x20] sm:$0xf] %vm764_vm0, %v1064_v6 }
 0x2c9   : > { %895 = vxpose.xlu1.b32.cont [2/4] (short) (narrow) %v1791_v7, 32 }
 0x2ca   : > { %v950_v8 = vpop.permute.xlu1 %949 }
 0x2cb   : > { %v965_v9 = vpop.permute.xlu0 %964  ;;  %1565 = vst.msk [vmem:[%s2318_s3 + $0x14] sm:$0xf] %vm764_vm0, %v950_v8 }
 0x2cc   : > { %1568 = vst.msk [vmem:[%s2326_s26 + $0x10] sm:$0xf] %vm764_vm0, %v965_v9 }
 0x2ce   : > { %v866_v10 = vpop.permute.xlu1 %865 }
 0x2cf   : > { %v1081_v12 = vpop.permute.xlu0 %1080  ;;  %1554 = vst.msk [vmem:[%s2303_s18 + $0x18] sm:$0xf] %vm764_vm0, %v866_v10 }
 0x2d0   : > { %1588 = vst.msk [vmem:[%s2326_s26 + $0x20] sm:$0xf] %vm764_vm0, %v1081_v12 }
 0x2d2   : > { %v986_v13 = vpop.permute.xlu1 %985 }
 0x2d3   : > { %v984_v14 = vpop.permute.xlu0 %983  ;;  %1574 = vst.msk [vmem:[%s2303_s18 + $0x28] sm:$0xf] %vm764_vm0, %v986_v13 }
 0x2d4   : > { %1573 = vst.msk [vmem:[%s2303_s18 + $0x24] sm:$0xf] %vm764_vm0, %v984_v14 }
 0x2d6   : > { %v868_v11 = vpop.permute.xlu1 %867 }
 0x2d7   : > { %v2452_v15 = vpop.permute.xlu0 %1798  ;;  %1555 = vst.msk [vmem:[%s2303_s18 + $0x1c] sm:$0xf] %vm764_vm0, %v868_v11 }
 0x2d8   : > { %987 = vrot.lane.b32.xlu0 %v2366_v55, %s2092_s20 }
 0x2da   : > { %v1804_v16 = vpop.permute.xlu1 %1803 }
 0x2db   : > { %v1100_v17 = vpop.permute.xlu0 %1099  ;;  %v1805_v18 = vunpack.i.l.bf16 %v1804_v16  ;;  %v1806_v21 = vunpack.i.h.bf16 %v1804_v16 }
 0x2dc   : > { %1593 = vst.msk [vmem:[%s2303_s18 + $0x34] sm:$0xf] %vm764_vm0, %v1100_v17  ;;  %1808 = vrot.lane.b32.xlu0 %v2401_v59, %s2092_s20 }
 0x2dd   : > { %896 = vxpose.xlu1.b32.cont [3/4] (short) (narrow) %v1805_v18, 32 }
 0x2de   : > { %v1104_v19 = vpop.permute.xlu1 %1103 }
 0x2df   : > { %v971_v20 = vpop.permute.xlu0 %970  ;;  %1595 = vst.msk [vmem:[%s2303_s18 + $0x3c] sm:$0xf] %vm764_vm0, %v1104_v19 }
 0x2e0   : > { %1571 = vst.msk [vmem:[%s2326_s26 + $0x1c] sm:$0xf] %vm764_vm0, %v971_v20  ;;  %1813 = vrot.lane.b32.xlu0 %v2401_v59, %s2090_s25 }
 0x2e1   : > { %897 = vxpose.xlu1.b32.end [4/4] (short) (narrow) %v1806_v21, 32 }
 0x2e3   : > { %v1087_v22 = vpop.permute.xlu0 %1086 }
 0x2e4   : > { %1591 = vst.msk [vmem:[%s2326_s26 + $0x2c] sm:$0xf] %vm764_vm0, %v1087_v22  ;;  %1101 = vrot.lane.b32.xlu0 %v2343_v46, %s2090_s25 }
 0x2e5   : > { %1010 = vxpose.xlu1.b32.start [1/4] (short) (narrow) %v1795_v23, 32 }
 0x2e7   : > { %v1066_v24 = vpop.permute.xlu0 %1065 }
 0x2e8   : > { %1585 = vst.msk [vmem:[%s2318_s3 + $0x24] sm:$0xf] %vm764_vm0, %v1066_v24  ;;  %1179 = vrot.lane.b32.xlu0 %v2311_v31, %s2090_s25 }
 0x2e9   : > { %1011 = vxpose.xlu1.b32.cont [2/4] (short) (narrow) %v1796_v25, 32 }
 0x2eb   : > { %v967_v26 = vpop.permute.xlu0 %966 }
 0x2ec   : > { %1569 = vst.msk [vmem:[%s2326_s26 + $0x14] sm:$0xf] %vm764_vm0, %v967_v26  ;;  %1181 = vrot.lane.b32.xlu0 %v2338_v45, %s2090_s25 }
 0x2ef   : > { %v1083_v27 = vpop.permute.xlu0 %1082 }
 0x2f0   : > { %1589 = vst.msk [vmem:[%s2326_s26 + $0x24] sm:$0xf] %vm764_vm0, %v1083_v27  ;;  %1183 = vrot.lane.b32.xlu0 %v2361_v53, %s2090_s25 }
 0x2f3   : > { %v952_v28 = vpop.permute.xlu0 %951 }
 0x2f4   : > { %1566 = vst.msk [vmem:[%s2318_s3 + $0x18] sm:$0xf] %vm764_vm0, %v952_v28  ;;  %1196 = vrot.lane.b32.xlu0 %v2331_v40, %s2090_s25 }
 0x2f7   : > { %v1068_v29 = vpop.permute.xlu0 %1067 }
 0x2f8   : > { %1586 = vst.msk [vmem:[%s2318_s3 + $0x28] sm:$0xf] %vm764_vm0, %v1068_v29  ;;  %1198 = vrot.lane.b32.xlu0 %v2356_v51, %s2090_s25  ;;  %v1801_v51 = vunpack.i.h.bf16 %v2452_v15 }
 0x2fc   : > { %1200 = vrot.lane.b32.xlu0 %v2313_v35, %s2090_s25 }
 0x300   : > { %953 = vrot.lane.b32.xlu0 %v2379_v58, %s2091_s22 }
 0x304   : > { %1069 = vrot.lane.b32.xlu0 %v2379_v58, %s2092_s20 }
 0x308   : > { %1185 = vrot.lane.b32.xlu0 %v2379_v58, %s2090_s25 }
 0x30c   : > { %1202 = vrot.lane.b32.xlu0 %v2345_v47, %s2090_s25  ;;  %v1800_v47 = vunpack.i.l.bf16 %v2452_v15  ;;  %s1917_s25 = scalar_lea.vmem %s1916_s24, 2048 }
 0x30d   : > { %p1919_p5 = scmp.lt.s32.totalorder %s1917_s25, %s1911_s15 }
 0x30f   : > { %p1920_p7 = por %p1919_p5, %p1918_p3 }
 0x311   : > { %p1921_p2 = pnand %p1920_p7, %p1914_p12 }
 0x31f   : > { %v785_v30 = vpop.trf.xlu0 }
 0x320   : > { %v1631_v31 = vpack.c.bf16 %v785_v30, %v785_v30 }
 0x322   : > { %817 = vst.msk [vmem:[%s2503_s9] sm:$0xf] %vm764_vm0, %v1631_v31 }
 0x323   : > { %v786_v32 = vpop.trf.xlu0 }
 0x324   : > { %v1632_v33 = vpack.c.bf16 %v786_v32, %v786_v32 }
 0x326   : > { %818 = vst.msk [vmem:[%s2503_s9 + $0x4] sm:$0xf] %vm764_vm0, %v1632_v33 }
 0x327   : > { %v787_v34 = vpop.trf.xlu0 }
 0x328   : > { %v1633_v35 = vpack.c.bf16 %v787_v34, %v787_v34 }
 0x32a   : > { %819 = vst.msk [vmem:[%s2503_s9 + $0x8] sm:$0xf] %vm764_vm0, %v1633_v35 }
 0x32b   : > { %v788_v36 = vpop.trf.xlu0 }
 0x32c   : > { %v1634_v37 = vpack.c.bf16 %v788_v36, %v788_v36 }
 0x32e   : > { %820 = vst.msk [vmem:[%s2503_s9 + $0xc] sm:$0xf] %vm764_vm0, %v1634_v37 }
 0x34a   : > { %v988_v38 = vpop.permute.xlu0 %987 }
 0x34b   : > { %1575 = vst.msk [vmem:[%s2303_s18 + $0x2c] sm:$0xf] %vm764_vm0, %v988_v38 }
 0x34e   : > { %v1809_v39 = vpop.permute.xlu0 %1808 }
 0x34f   : > { %v1810_v40 = vunpack.i.l.bf16 %v1809_v39  ;;  %v1811_v43 = vunpack.i.h.bf16 %v1809_v39 }
 0x351   : > { %1012 = vxpose.xlu1.b32.cont [3/4] (short) (narrow) %v1810_v40, 32  ;;  %v910_v42 = vpop.trf.xlu1 }
 0x352   : > { %v1814_v41 = vpop.permute.xlu0 %1813  ;;  %v1643_v44 = vpack.c.bf16 %v910_v42, %v910_v42 }
 0x353   : > { %v1815_v55 = vunpack.i.l.bf16 %v1814_v41  ;;  %v1816_v58 = vunpack.i.h.bf16 %v1814_v41 }
 0x354   : > { %1560 = vst.msk [vmem:[%s2503_s9 + $0x10] sm:$0xf] %vm764_vm0, %v1643_v44 }
 0x355   : > { %1013 = vxpose.xlu1.b32.end [4/4] (short) (narrow) %v1811_v43, 32  ;;  %v911_v46 = vpop.trf.xlu1 }
 0x356   : > { %v1102_v45 = vpop.permute.xlu0 %1101  ;;  %v1644_v48 = vpack.c.bf16 %v911_v46, %v911_v46 }
 0x357   : > { %1594 = vst.msk [vmem:[%s2303_s18 + $0x38] sm:$0xf] %vm764_vm0, %v1102_v45 }
 0x358   : > { %1561 = vst.msk [vmem:[%s2503_s9 + $0x14] sm:$0xf] %vm764_vm0, %v1644_v48 }
 0x359   : > { %1126 = vxpose.xlu1.b32.start [1/4] (short) (narrow) %v1800_v47, 32  ;;  %v912_v50 = vpop.trf.xlu1 }
 0x35a   : > { %v1180_v49 = vpop.permute.xlu0 %1179  ;;  %v1645_v52 = vpack.c.bf16 %v912_v50, %v912_v50 }
 0x35b   : > { %1604 = vst.msk [vmem:[%s2318_s3 + $0x30] sm:$0xf] %vm764_vm0, %v1180_v49 }
 0x35c   : > { %1562 = vst.msk [vmem:[%s2503_s9 + $0x18] sm:$0xf] %vm764_vm0, %v1645_v52 }
 0x35d   : > { %1127 = vxpose.xlu1.b32.cont [2/4] (short) (narrow) %v1801_v51, 32  ;;  %v913_v54 = vpop.trf.xlu1 }
 0x35e   : > { %v1182_v53 = vpop.permute.xlu0 %1181  ;;  %v1646_v56 = vpack.c.bf16 %v913_v54, %v913_v54 }
 0x35f   : > { %1605 = vst.msk [vmem:[%s2318_s3 + $0x34] sm:$0xf] %vm764_vm0, %v1182_v53 }
 0x360   : > { %1563 = vst.msk [vmem:[%s2503_s9 + $0x1c] sm:$0xf] %vm764_vm0, %v1646_v56 }
 0x361   : > { %1128 = vxpose.xlu1.b32.cont [3/4] (short) (narrow) %v1815_v55, 32 }
 0x362   : > { %v1184_v57 = vpop.permute.xlu0 %1183 }
 0x363   : > { %1606 = vst.msk [vmem:[%s2318_s3 + $0x38] sm:$0xf] %vm764_vm0, %v1184_v57 }
 0x365   : > { %1129 = vxpose.xlu1.b32.end [4/4] (short) (narrow) %v1816_v58, 32 }
 0x366   : > { %v1197_v59 = vpop.permute.xlu0 %1196 }
 0x367   : > { %1608 = vst.msk [vmem:[%s2326_s26 + $0x30] sm:$0xf] %vm764_vm0, %v1197_v59 }
 0x36a   : > { %v1199_v60 = vpop.permute.xlu0 %1198 }
 0x36b   : > { %1609 = vst.msk [vmem:[%s2326_s26 + $0x34] sm:$0xf] %vm764_vm0, %v1199_v60 }
 0x36c   : > { %1924 = shalt.err (!%p1921_p2)
}
 0x36d   : > { %s1925_s18 = scalar_lea.hbm %s2542_s13, 1024  ;;  %s1929_s12 = scalar_lea.hbm %s2733_s5, 2048 }
 0x36e   : > { %p1926_p6 = scmp.ne.s32.totalorder %s2542_s13, %s1925_s18  ;;  %p1930_p11 = scmp.lt.s32.totalorder %s2542_s13, %s2733_s5 }
 0x36f   : > { %p1931_p1 = scmp.lt.s32.totalorder %s1929_s12, %s1925_s18 }
 0x370   : > { %p1927_p9 = pnand %p1926_p6, %p2228_p0 }
 0x371   : > { %p1932_p10 = por %p1931_p1, %p1930_p11 }
 0x372   : > { %p1928_p13 = pneg %p1927_p9 }
 0x374   : > { %p1933_p4 = pnand %p1932_p10, %p1928_p13 }
 0x376   : > { %1936 = shalt.err (!%p1933_p4)
}
 0x377   : > { %s2094_s15 = smov 4   ;;  %s2759_s24 = scalar_lea.sflag [#allocation4], %s2256_s17  ;;  %v1201_v61 = vpop.permute.xlu0 %1200 }
 0x378   : > { %1695 = dma.vmem_to_hbm [thread:$0]  (%p2228_p0), %s2545_s14, 1024, %s2542_s13, %s2759_s24, %s2092_s20, %s2092_s20, %s2094_s15  }
 0x379   : > { %1610 = vst.msk [vmem:[%s2326_s26 + $0x38] sm:$0xf] %vm764_vm0, %v1201_v61  ;;  %s1297_s30 = sshll.u32 %s2326_s26, 4  ;;  %s2588_s22 = scalar_lea.hbm %s2736_s8, %s2534_s23  ;;  %s2590_s30 = int_to_ptr.vmem [resolvable:$true] %s1297_s30 }
 0x37a   : > { %s1229_s13 = scalar_lea.sflag [#allocation12], %s2256_s17  ;;  %s1937_s14 = scalar_lea.vmem %s2590_s30, 1024 }
 0x37b   : > { %v954_v62 = vpop.permute.xlu0 %953  ;;  %p1938_p8 = scmp.ne.s32.totalorder %s2590_s30, %s1937_s14  ;;  %s2095_s27 = smov [#allocation11]  }
 0x37c   : > { %1567 = vst.msk [vmem:[%s2318_s3 + $0x1c] sm:$0xf] %vm764_vm0, %v954_v62  ;;  %s1941_s12 = sshll.u32 %s2095_s27, 4  ;;  %s1942_s12 = int_to_ptr.vmem [resolvable:$false] %s1941_s12 }
 0x37d   : > { %p1939_p12 = pnand %p1938_p8, %p2228_p0  ;;  %s1943_s19 = scalar_lea.vmem %s1942_s12, 2048 }
 0x37e   : > { %p1944_p5 = scmp.lt.s32.totalorder %s2590_s30, %s1942_s12  ;;  %p1945_p7 = scmp.lt.s32.totalorder %s1943_s19, %s1937_s14 }
 0x37f   : > { %v1070_v63 = vpop.permute.xlu0 %1069  ;;  %p1940_p3 = pneg %p1939_p12 }
 0x380   : > { %1587 = vst.msk [vmem:[%s2318_s3 + $0x2c] sm:$0xf] %vm764_vm0, %v1070_v63  ;;  %p1946_p2 = por %p1945_p7, %p1944_p5 }
 0x382   : > { %p1947_p6 = pnand %p1946_p2, %p1940_p3 }
 0x383   : > { %v1186_v0 = vpop.permute.xlu0 %1185 }
 0x384   : > { %1607 = vst.msk [vmem:[%s2318_s3 + $0x3c] sm:$0xf] %vm764_vm0, %v1186_v0 }
 0x387   : > { %v1203_v1 = vpop.permute.xlu0 %1202 }
 0x388   : > { %1611 = vst.msk [vmem:[%s2326_s26 + $0x3c] sm:$0xf] %vm764_vm0, %v1203_v1 }
 0x389   : > { %1950 = shalt.err (!%p1947_p6)
}
 0x38a   : > { %s1951_s26 = scalar_lea.hbm %s2588_s22, 1024  ;;  %s1955_s25 = scalar_lea.hbm %s2736_s8, 2048 }
 0x38b   : > { %p1952_p9 = scmp.ne.s32.totalorder %s2588_s22, %s1951_s26  ;;  %p1956_p1 = scmp.lt.s32.totalorder %s2588_s22, %s2736_s8 }
 0x38c   : > { %p1957_p10 = scmp.lt.s32.totalorder %s1955_s25, %s1951_s26 }
 0x38d   : > { %p1953_p13 = pnand %p1952_p9, %p2228_p0 }
 0x38e   : > { %p1958_p4 = por %p1957_p10, %p1956_p1 }
 0x38f   : > { %p1954_p11 = pneg %p1953_p13 }
 0x391   : > { %p1959_p8 = pnand %p1958_p4, %p1954_p11 }
 0x393   : > { %1962 = shalt.err (!%p1959_p8)
}
 0x394   : > { %1698 = dma.vmem_to_hbm [thread:$0]  (%p2228_p0), %s2590_s30, 1024, %s2588_s22, %s1229_s13, %s2092_s20, %s2092_s20, %s2094_s15  }
 0x395   : > { %s1218_s30 = sand.u32 1, %s2174_s11   ;;  %s1261_s22 = sshll.u32 %s2503_s9, 4  ;;  %s2641_s22 = int_to_ptr.vmem [resolvable:$true] %s1261_s22 }
 0x396   : > { %s1279_s13 = sshll.u32 %s2318_s3, 4  ;;  %s2639_s19 = scalar_lea.hbm %s2734_s6, %s2534_s23  ;;  %s2649_s13 = int_to_ptr.vmem [resolvable:$true] %s1279_s13 }
 0x397   : > { %s2647_s11 = scalar_lea.hbm %s2735_s7, %s2534_s23  ;;  %s2653_s3 = scalar_lea.sflag [#allocation9], %s1218_s30 }
 0x398   : > { %s1963_s24 = scalar_lea.vmem %s2641_s22, 1024  ;;  %s2096_s25 = smov [#allocation8]  }
 0x399   : > { %p1964_p12 = scmp.ne.s32.totalorder %s2641_s22, %s1963_s24  ;;  %s1967_s18 = sshll.u32 %s2096_s25, 4  ;;  %s1968_s18 = int_to_ptr.vmem [resolvable:$false] %s1967_s18 }
 0x39a   : > { %s1969_s27 = scalar_lea.vmem %s1968_s18, 2048  ;;  %p1970_p7 = scmp.lt.s32.totalorder %s2641_s22, %s1968_s18 }
 0x39b   : > { %p1965_p3 = pnand %p1964_p12, %p2228_p0  ;;  %p1971_p2 = scmp.lt.s32.totalorder %s1969_s27, %s1963_s24 }
 0x39d   : > { %p1966_p5 = pneg %p1965_p3  ;;  %p1972_p6 = por %p1971_p2, %p1970_p7 }
 0x39f   : > { %p1973_p9 = pnand %p1972_p6, %p1966_p5 }
 0x3c5   : > { %v1026_v2 = vpop.trf.xlu1 }
 0x3c6   : > { %v1647_v3 = vpack.c.bf16 %v1026_v2, %v1026_v2 }
 0x3c8   : > { %1580 = vst.msk [vmem:[%s2503_s9 + $0x20] sm:$0xf] %vm764_vm0, %v1647_v3 }
 0x3c9   : > { %v1027_v4 = vpop.trf.xlu1 }
 0x3ca   : > { %v1648_v5 = vpack.c.bf16 %v1027_v4, %v1027_v4 }
 0x3cc   : > { %1581 = vst.msk [vmem:[%s2503_s9 + $0x24] sm:$0xf] %vm764_vm0, %v1648_v5 }
 0x3cd   : > { %v1028_v6 = vpop.trf.xlu1 }
 0x3ce   : > { %v1649_v7 = vpack.c.bf16 %v1028_v6, %v1028_v6 }
 0x3d0   : > { %1582 = vst.msk [vmem:[%s2503_s9 + $0x28] sm:$0xf] %vm764_vm0, %v1649_v7 }
 0x3d1   : > { %v1029_v8 = vpop.trf.xlu1 }
 0x3d2   : > { %v1650_v9 = vpack.c.bf16 %v1029_v8, %v1029_v8 }
 0x3d4   : > { %1583 = vst.msk [vmem:[%s2503_s9 + $0x2c] sm:$0xf] %vm764_vm0, %v1650_v9 }
 0x3d5   : > { %v1142_v10 = vpop.trf.xlu1 }
 0x3d6   : > { %v1651_v12 = vpack.c.bf16 %v1142_v10, %v1142_v10 }
 0x3d8   : > { %1600 = vst.msk [vmem:[%s2503_s9 + $0x30] sm:$0xf] %vm764_vm0, %v1651_v12 }
 0x3d9   : > { %v1143_v13 = vpop.trf.xlu1 }
 0x3da   : > { %v1652_v14 = vpack.c.bf16 %v1143_v13, %v1143_v13 }
 0x3dc   : > { %1601 = vst.msk [vmem:[%s2503_s9 + $0x34] sm:$0xf] %vm764_vm0, %v1652_v14 }
 0x3dd   : > { %v1144_v11 = vpop.trf.xlu1 }
 0x3de   : > { %v1653_v15 = vpack.c.bf16 %v1144_v11, %v1144_v11 }
 0x3e0   : > { %1602 = vst.msk [vmem:[%s2503_s9 + $0x38] sm:$0xf] %vm764_vm0, %v1653_v15 }
 0x3e1   : > { %v1145_v16 = vpop.trf.xlu1 }
 0x3e2   : > { %v1654_v17 = vpack.c.bf16 %v1145_v16, %v1145_v16 }
 0x3e4   : > { %1603 = vst.msk [vmem:[%s2503_s9 + $0x3c] sm:$0xf] %vm764_vm0, %v1654_v17 }
 0x3e5   : > { %1976 = shalt.err (!%p1973_p9)
}
 0x3e6   : > { %s1977_s9 = scalar_lea.hbm %s2639_s19, 1024  ;;  %s1981_s14 = scalar_lea.hbm %s2734_s6, 2048 }
 0x3e7   : > { %p1978_p13 = scmp.ne.s32.totalorder %s2639_s19, %s1977_s9  ;;  %p1982_p10 = scmp.lt.s32.totalorder %s2639_s19, %s2734_s6 }
 0x3e8   : > { %p1983_p4 = scmp.lt.s32.totalorder %s1981_s14, %s1977_s9 }
 0x3e9   : > { %p1979_p11 = pnand %p1978_p13, %p2228_p0 }
 0x3ea   : > { %p1984_p8 = por %p1983_p4, %p1982_p10 }
 0x3eb   : > { %p1980_p1 = pneg %p1979_p11 }
 0x3ed   : > { %p1985_p12 = pnand %p1984_p8, %p1980_p1 }
 0x3ef   : > { %1988 = shalt.err (!%p1985_p12)
}
 0x3f0   : > { %1696 = dma.vmem_to_hbm [thread:$0]  (%p2228_p0), %s2641_s22, 1024, %s2639_s19, %s2653_s3, %s2092_s20, %s2092_s20, %s2094_s15  }
 0x3f1   : > { %s1989_s17 = scalar_lea.vmem %s2649_s13, 1024  ;;  %s2097_s24 = smov [#allocation10]  }
 0x3f2   : > { %p1990_p3 = scmp.ne.s32.totalorder %s2649_s13, %s1989_s17  ;;  %s1993_s25 = sshll.u32 %s2097_s24, 4  ;;  %s1994_s25 = int_to_ptr.vmem [resolvable:$false] %s1993_s25 }
 0x3f3   : > { %s1995_s18 = scalar_lea.vmem %s1994_s25, 2048  ;;  %p1996_p2 = scmp.lt.s32.totalorder %s2649_s13, %s1994_s25 }
 0x3f4   : > { %p1991_p5 = pnand %p1990_p3, %p2228_p0  ;;  %p1997_p6 = scmp.lt.s32.totalorder %s1995_s18, %s1989_s17 }
 0x3f6   : > { %p1992_p7 = pneg %p1991_p5  ;;  %p1998_p9 = por %p1997_p6, %p1996_p2 }
 0x3f8   : > { %p1999_p13 = pnand %p1998_p9, %p1992_p7 }
 0x3fa   : > { %2002 = shalt.err (!%p1999_p13)
}
 0x3fb   : > { %s2003_s27 = scalar_lea.hbm %s2647_s11, 1024  ;;  %s2007_s9 = scalar_lea.hbm %s2735_s7, 2048 }
 0x3fc   : > { %p2004_p11 = scmp.ne.s32.totalorder %s2647_s11, %s2003_s27  ;;  %p2008_p4 = scmp.lt.s32.totalorder %s2647_s11, %s2735_s7 }
 0x3fd   : > { %p2009_p8 = scmp.lt.s32.totalorder %s2007_s9, %s2003_s27 }
 0x3fe   : > { %p2005_p1 = pnand %p2004_p11, %p2228_p0 }
 0x3ff   : > { %p2010_p12 = por %p2009_p8, %p2008_p4 }
 0x400   : > { %p2006_p10 = pneg %p2005_p1 }
 0x402   : > { %p2011_p3 = pnand %p2010_p12, %p2006_p10 }
 0x404   : > { %2014 = shalt.err (!%p2011_p3)
}
 0x405   : > { %1697 = dma.vmem_to_hbm [thread:$0]  (%p2228_p0), %s2649_s13, 1024, %s2647_s11, %s2653_s3, %s2092_s20, %s2092_s20, %s2094_s15  }
 0x406 PF: > { %s2760_s14 = sld [smem:[#allocation18_spill]]  ;;  %p2763_p7 = scmp.ge.s32.totalorder %s2081_s10, 2 }
 0x407   : > { %s2761_s12 = sld [smem:[#allocation20_spill]] }
 0x40c   : > { %s1312_s26 = sand.u32 1, %s2760_s14  }
 0x40d   : > { %p2762_p5 = scmp.ne.s32.totalorder %s2761_s12, 0  ;;  %s1313_s17 = scalar_lea.sflag [#allocation4], %s1312_s26 }
 0x40f   : > { %p1712_p2 = pnand %p2763_p7, %p2762_p5 }
 0x411   : > { %p1713_p6 = pneg %p1712_p2 }
 0x413   : > { %2048 = dma.done.wait (%p1713_p6), %s1313_s17, 1024  }
 0x414   : > { %2050 = vsyncadd (%p1713_p6), %s1313_s17, 4294966272  ;;  %s2764_s16 = sadd.s32 4294967294, %s2081_s10  }
 0x415   : > { %s1321_s24 = sand.u32 1, %s2764_s16  }
 0x416   : > { %s1322_s25 = scalar_lea.sflag [#allocation9], %s1321_s24 }
 0x417   : > { %2052 = dma.done.wait (%p1713_p6), %s1322_s25, 2048  }
 0x418   : > { %2054 = vsyncadd (%p1713_p6), %s1322_s25, 4294965248  ;;  %s1340_s18 = scalar_lea.sflag [#allocation12], %s1312_s26 }
 0x419   : > { %2056 = dma.done.wait (%p1713_p6), %s1340_s18, 1024  }
 0x41a   : > { %2058 = vsyncadd (%p1713_p6), %s1340_s18, 4294966272  ;;  %s32_s10 = sadd.s32 1, %s2081_s10   ;;  %s2765_s30 = sld [smem:[#allocation19_spill]] }
 0x41b   : > { %p29_p0 = scmp.ge.s32.totalorder %s32_s10, 4   ;;  %s2766_s9 = sld [smem:[#allocation21_spill]] }
 0x41c   : > { %s2767_s27 = smov %s2065_s28  ;;  %s2768_s28 = smov %s2069_s29 }
 0x41d   : > { %s2769_s29 = smov %s2237_s21  ;;  %31 = sbr.rel (!%p29_p0) target bundleno = 13 (0xd), region = 150 }
 0x422   :  { %1345 = vsyncpa [#allocation3], 1 }
 0x423   :  { %1347 = vsyncpa [#allocation3 + $0x1], 1 }
 0x424   :  { %1348 = vsyncpa [#allocation6], 1 }
 0x425   :  { %1349 = vsyncpa [#allocation4], 1 }
 0x426   :  { %1351 = vsyncpa [#allocation4 + $0x1], 1 }
 0x427   :  { %1352 = vsyncpa [#allocation9], 1 }
 0x428   :  { %1354 = vsyncpa [#allocation9 + $0x1], 1 }
 0x429   :  { %1355 = vsyncpa [#allocation12], 1 }
 0x42a   :  { %1357 = vsyncpa [#allocation12 + $0x1], 1 }

</bundles_post_ra>
